<compile_context>
chip_gen: v6e
topology: v6e:2x2x1
jax: 0.10.0
libtpu: 0.0.40
codegen_flags: <defaults>
</compile_context>

<pallas_src>
import numpy as np
import jax
import jax.numpy as jnp
from jax import lax
from jax.experimental import pallas as pl
from jax.experimental.pallas import tpu as pltpu


# --------------------------------------------------------------------------
# Kernel: a straight chain of dense matmuls on (features, block_n) tiles.
# --------------------------------------------------------------------------
def _regression_kernel(x_ref, wc_ref, bc_ref, w1_ref, b1_ref,
                       w2_ref, b2_ref, w3_ref, b3_ref, w4_ref, b4_ref,
                       out_ref):
    cd = wc_ref.dtype                              # compute dtype (bf16)

    # x tile arrives as (block_n, Cin*L) f32 (natural layout, read once from
    # HBM).  Cast the small tile once, then contract feature-vs-feature; the
    # result is (L_out*C, block_n) with the batch on the lane axis.
    xb = x_ref[...].astype(cd)                                       # (TB, K)
    acc = lax.dot_general(wc_ref[...], xb,
                          (((1,), (1,)), ((), ())),
                          preferred_element_type=jnp.float32)        # (LC, TB)
    # bias + ReLU in bf16 (f32 accumulation already done inside the dot).
    h = jnp.maximum(acc.astype(cd) + bc_ref[...], 0)

    def dense_relu(w_ref, b_ref, h):
        a = jnp.dot(w_ref[...], h, preferred_element_type=jnp.float32)
        return jnp.maximum(a.astype(cd) + b_ref[...], 0)

    h = dense_relu(w1_ref, b1_ref, h)   # avgpool(2)+flatten+linear1200_80+ReLU
    h = dense_relu(w2_ref, b2_ref, h)   # linear80_40 + ReLU
    h = dense_relu(w3_ref, b3_ref, h)   # linear40_40 + ReLU

    # Final (40 -> 1) layer: VPU multiply + sublane reduce (an M=1 MXU matmul
    # would be <1% utilized); accumulate in f32.
    out = jnp.sum(h.astype(jnp.float32) * w4_ref[...], axis=0, keepdims=True)
    out_ref[...] = (out + b4_ref[...]).astype(out_ref.dtype)         # (1, TB)


# --------------------------------------------------------------------------
# Host-side parameter folding (numpy, run ONCE at init -- hoisted out of the
# per-call path).  Params come in the layout the original wrapper used:
#   wc:(C,Cin,K)  bc:(C,1)  w1:(C*L_pool,F1)=W1^T  b1:(1,F1)
#   w2:(F1,F2)=W2^T  b2:(1,F2)  w3:(F2,40)=W3^T  b3:(1,40)
#   w4:(40,1)=W4^T  b4:(1,1)
# --------------------------------------------------------------------------
def fold_params(params, Cin=4, L=34, compute_dtype=jnp.bfloat16):
    wc, bc, w1, b1, w2, b2, w3, b3, w4, b4 = [
        np.asarray(p, np.float32) for p in params]
    C, Cin_w, K = wc.shape
    assert Cin_w == Cin
    L_out = L - K + 1
    Lp = L_out // 2
    F1 = w1.shape[1]

    # Conv1d -> one matmul: Wconv[l*C + c, i*L + l + k] = wc[c, i, k].
    wconv = np.zeros((L_out * C, Cin * L), np.float32)
    for l in range(L_out):
        for k in range(K):
            wconv[l * C:(l + 1) * C, np.arange(Cin) * L + l + k] = wc[:, :, k]
    bconv = np.tile(bc.reshape(-1), L_out).reshape(L_out * C, 1)

    # avgpool(2)+flatten+linear1 fold: W1fold[l*C+c, f] = 0.5*w1[c*Lp + l//2, f]
    # (odd tail position dropped, matching torch avg_pool1d truncation).
    w1r = w1.reshape(C, Lp, F1)
    g = np.zeros((L_out, C, F1), np.float32)
    g[:2 * Lp] = 0.5 * np.transpose(w1r[:, np.arange(2 * Lp) // 2, :], (1, 0, 2))
    w1fold = g.reshape(L_out * C, F1)

    # NOTE: a further v5e-only micro-opt would fold bconv into wconv via a
    # constant ones row; skipped to keep one code path (bf16 bias add is the
    # win on v6e/v7x).
    cd = compute_dtype
    f32 = jnp.float32
    return (
        jnp.asarray(wconv, cd),      jnp.asarray(bconv, cd),
        jnp.asarray(w1fold.T, cd),   jnp.asarray(b1.reshape(-1, 1), cd),
        jnp.asarray(w2.T, cd),       jnp.asarray(b2.reshape(-1, 1), cd),
        jnp.asarray(w3.T, cd),       jnp.asarray(b3.reshape(-1, 1), cd),
        jnp.asarray(w4.reshape(-1, 1), f32), jnp.asarray(b4.reshape(1, 1), f32),
    )


def _round_up(n, m):
    return (n + m - 1) // m * m


def _pick_block_n(n_pad):
    # Largest lane-sized tile; prefer an EVEN number of grid steps so the two
    # TensorCores on v7x get balanced work under dimension_semantics=parallel.
    cands = (4096, 2048, 1024, 512, 256, 128)
    for bn in cands:
        if n_pad % bn == 0 and (n_pad // bn) >= 2 and (n_pad // bn) % 2 == 0:
            return bn
    for bn in cands:
        if n_pad % bn == 0 and (n_pad // bn) >= 2:
            return bn
    return n_pad          # single tile (n_pad is already a multiple of 128)


def _const_spec(a):
    # Constant operand: block index never changes -> single-buffer it.
    try:
        return pl.BlockSpec(a.shape, lambda i: (0, 0),
                            pipeline_mode=pl.Buffered(1))
    except TypeError:      # older jax without pipeline_mode kwarg
        return pl.BlockSpec(a.shape, lambda i: (0, 0))


def regression_forward(x, folded, *, block_n=None):
    """x: (N, 4, L) float32; folded: fold_params(...) output. Returns (N,) f32."""
    N, Cin, L = x.shape
    Kf = Cin * L
    assert folded[0].shape[1] == Kf

    x2 = x.reshape(N, Kf)                      # contiguous -> free view
    n_pad = _round_up(N, 128)
    if n_pad != N:                             # keep DMAs / stores lane-dense
        x2 = jnp.pad(x2, ((0, n_pad - N), (0, 0)))
    if block_n is None:
        block_n = _pick_block_n(n_pad)
    n_blocks = n_pad // block_n

    in_specs = [pl.BlockSpec((block_n, Kf), lambda i: (i, 0))]
    in_specs += [_const_spec(a) for a in folded]
    out_specs = pl.BlockSpec((1, block_n), lambda i: (0, i))

    out = pl.pallas_call(
        _regression_kernel,
        grid=(n_blocks,),
        in_specs=in_specs,
        out_specs=out_specs,
        out_shape=jax.ShapeDtypeStruct((1, n_pad), jnp.float32),
        compiler_params=pltpu.CompilerParams(
            dimension_semantics=("parallel",),
            # Raised explicitly so block_n up to 4096 also fits v5e's 16 MiB
            # scoped-VMEM default; well under v7x's 64 MiB physical VMEM.
            vmem_limit_bytes=40 * 1024 * 1024),
    )(x2, *folded)
    return out[0, :N]


# --------------------------------------------------------------------------
# Pure-JAX f32 reference (mirrors the PyTorch graph) for correctness checks.
# --------------------------------------------------------------------------
def _ref_forward(x, params):
    wc, bc, w1, b1, w2, b2, w3, b3, w4, b4 = params
    y = lax.conv_general_dilated(
        x, wc, window_strides=(1,), padding="VALID",
        dimension_numbers=("NCH", "OIH", "NCH"))
    y = y + bc.reshape(1, -1, 1)
    y = jnp.maximum(y, 0.0)
    L_out = y.shape[-1]
    Lp = L_out // 2
    y = y[:, :, :2 * Lp].reshape(y.shape[0], y.shape[1], Lp, 2).mean(-1)
    y = y.reshape(y.shape[0], -1)
    y = jnp.maximum(y @ w1 + b1, 0.0)
    y = jnp.maximum(y @ w2 + b2, 0.0)
    y = jnp.maximum(y @ w3 + b3, 0.0)
    y = y @ w4 + b4
    return y[:, 0]


if __name__ == "__main__":
    # Small but forward-consistent config (seq length 34 is fixed by the module).
    N = 256          # batch -> block_n=128, grid of 2 (feeds both TCs on v7x)
    C_IN = 4         # one-hot nucleotide channels
    L = 34           # sequence length (hard-coded in the module)
    C_OUT = 16       # conv1d_out_channels
    K = 5            # conv1d_kernel_size
    F1 = 32          # linear1200_80_out_features
    F2 = 16          # linear80_40_out_features
    L_POOL = (L - K + 1) // 2
    FLAT = C_OUT * L_POOL

    key = jax.random.PRNGKey(0)
    ks = jax.random.split(key, 11)
    x = jax.random.normal(ks[0], (N, C_IN, L), jnp.float32)

    params = (
        jax.random.normal(ks[1], (C_OUT, C_IN, K), jnp.float32) * 0.2,   # conv W
        jax.random.normal(ks[2], (C_OUT, 1), jnp.float32) * 0.1,         # conv b
        jax.random.normal(ks[3], (FLAT, F1), jnp.float32) * 0.1,         # linear1200_80 W^T
        jax.random.normal(ks[4], (1, F1), jnp.float32) * 0.1,            # linear1200_80 b
        jax.random.normal(ks[5], (F1, F2), jnp.float32) * 0.1,           # linear80_40 W^T
        jax.random.normal(ks[6], (1, F2), jnp.float32) * 0.1,            # linear80_40 b
        jax.random.normal(ks[7], (F2, 40), jnp.float32) * 0.1,           # linear40_40 W^T
        jax.random.normal(ks[8], (1, 40), jnp.float32) * 0.1,            # linear40_40 b
        jax.random.normal(ks[9], (40, 1), jnp.float32) * 0.1,            # linear40_1 W^T
        jax.random.normal(ks[10], (1, 1), jnp.float32) * 0.1,            # linear40_1 b
    )

    folded = fold_params(params, Cin=C_IN, L=L)      # one-time init work
    fwd = jax.jit(regression_forward)

    out = jax.block_until_ready(fwd(x, folded))
    ref = jax.block_until_ready(_ref_forward(x, params))

    assert out.shape == (N,)
    # Tolerance loosened because the kernel feeds bf16 into the MXU
    # (f32 accumulation); the algebra itself is exact.
    np.testing.assert_allclose(np.asarray(out), np.asarray(ref),
                               rtol=3e-2, atol=3e-2)
    print("KERNEL_OK")
</pallas_src>

<mosaic_0001>
module attributes {stable_mosaic.version = 11 : i64} {
  func.func @_regression_kernel(%arg0: i32, %arg1: memref<128x136xf32, #tpu.memory_space<vmem>>, %arg2: memref<480x136xbf16, #tpu.memory_space<vmem>>, %arg3: memref<480x1xbf16, #tpu.memory_space<vmem>>, %arg4: memref<32x480xbf16, #tpu.memory_space<vmem>>, %arg5: memref<32x1xbf16, #tpu.memory_space<vmem>>, %arg6: memref<16x32xbf16, #tpu.memory_space<vmem>>, %arg7: memref<16x1xbf16, #tpu.memory_space<vmem>>, %arg8: memref<40x16xbf16, #tpu.memory_space<vmem>>, %arg9: memref<40x1xbf16, #tpu.memory_space<vmem>>, %arg10: memref<40x1xf32, #tpu.memory_space<vmem>>, %arg11: memref<1x1xf32, #tpu.memory_space<vmem>>, %arg12: memref<1x128xf32, #tpu.memory_space<vmem>>) attributes {dimension_semantics = [#tpu.dimension_semantics<parallel>], iteration_bounds = array<i64: 2>, scalar_prefetch = 0 : i64, scratch_operands = 0 : i64, tpu.core_type = #tpu.core_type<tc>, window_params = [{transform_indices = @transform_0, window_bounds = array<i64: 128, 136>}, {pipeline_mode = #tpu.pipeline_mode<synchronous>, transform_indices = @transform_1, window_bounds = array<i64: 480, 136>}, {pipeline_mode = #tpu.pipeline_mode<synchronous>, transform_indices = @transform_2, window_bounds = array<i64: 480, 1>}, {pipeline_mode = #tpu.pipeline_mode<synchronous>, transform_indices = @transform_3, window_bounds = array<i64: 32, 480>}, {pipeline_mode = #tpu.pipeline_mode<synchronous>, transform_indices = @transform_4, window_bounds = array<i64: 32, 1>}, {pipeline_mode = #tpu.pipeline_mode<synchronous>, transform_indices = @transform_5, window_bounds = array<i64: 16, 32>}, {pipeline_mode = #tpu.pipeline_mode<synchronous>, transform_indices = @transform_6, window_bounds = array<i64: 16, 1>}, {pipeline_mode = #tpu.pipeline_mode<synchronous>, transform_indices = @transform_7, window_bounds = array<i64: 40, 16>}, {pipeline_mode = #tpu.pipeline_mode<synchronous>, transform_indices = @transform_8, window_bounds = array<i64: 40, 1>}, {pipeline_mode = #tpu.pipeline_mode<synchronous>, transform_indices = @transform_9, window_bounds = array<i64: 40, 1>}, {pipeline_mode = #tpu.pipeline_mode<synchronous>, transform_indices = @transform_10, window_bounds = array<i64: 1, 1>}, {transform_indices = @transform_11, window_bounds = array<i64: 1, 128>}]} {
    %c0 = arith.constant 0 : index
    %c0_0 = arith.constant 0 : index
    %0 = vector.load %arg1[%c0, %c0_0] : memref<128x136xf32, #tpu.memory_space<vmem>>, vector<128x136xf32>
    %1 = arith.truncf %0 : vector<128x136xf32> to vector<128x136xbf16>
    %c0_1 = arith.constant 0 : index
    %c0_2 = arith.constant 0 : index
    %2 = vector.load %arg2[%c0_1, %c0_2] : memref<480x136xbf16, #tpu.memory_space<vmem>>, vector<480x136xbf16>
    %cst = arith.constant dense<0.000000e+00> : vector<480x128xf32>
    %3 = tpu.matmul %2, %1, %cst {dimension_numbers = #tpu.dot_dimension_numbers<[1], [1], [0], [0], [0, 0, 1, 0], [], []>} : vector<480x136xbf16>, vector<128x136xbf16>, vector<480x128xf32> -> vector<480x128xf32>
    %4 = arith.truncf %3 : vector<480x128xf32> to vector<480x128xbf16>
    %c0_3 = arith.constant 0 : index
    %c0_4 = arith.constant 0 : index
    %5 = vector.load %arg3[%c0_3, %c0_4] : memref<480x1xbf16, #tpu.memory_space<vmem>>, vector<480x1xbf16>
    %6 = vector.broadcast %5 : vector<480x1xbf16> to vector<480x128xbf16>
    %7 = arith.addf %4, %6 : vector<480x128xbf16>
    %cst_5 = arith.constant 0.000000e+00 : bf16
    %8 = vector.broadcast %cst_5 : bf16 to vector<480x128xbf16>
    %9 = arith.maximumf %7, %8 : vector<480x128xbf16>
    %c0_6 = arith.constant 0 : index
    %c0_7 = arith.constant 0 : index
    %10 = vector.load %arg4[%c0_6, %c0_7] : memref<32x480xbf16, #tpu.memory_space<vmem>>, vector<32x480xbf16>
    %cst_8 = arith.constant dense<0.000000e+00> : vector<32x128xf32>
    %11 = tpu.matmul %10, %9, %cst_8 {dimension_numbers = #tpu.dot_dimension_numbers<[1], [0], [0], [1], [0, 0, 1, 1], [], []>} : vector<32x480xbf16>, vector<480x128xbf16>, vector<32x128xf32> -> vector<32x128xf32>
    %12 = arith.truncf %11 : vector<32x128xf32> to vector<32x128xbf16>
    %c0_9 = arith.constant 0 : index
    %c0_10 = arith.constant 0 : index
    %13 = vector.load %arg5[%c0_9, %c0_10] : memref<32x1xbf16, #tpu.memory_space<vmem>>, vector<32x1xbf16>
    %14 = vector.broadcast %13 : vector<32x1xbf16> to vector<32x128xbf16>
    %15 = arith.addf %12, %14 : vector<32x128xbf16>
    %cst_11 = arith.constant 0.000000e+00 : bf16
    %16 = vector.broadcast %cst_11 : bf16 to vector<32x128xbf16>
    %17 = arith.maximumf %15, %16 : vector<32x128xbf16>
    %c0_12 = arith.constant 0 : index
    %c0_13 = arith.constant 0 : index
    %18 = vector.load %arg6[%c0_12, %c0_13] : memref<16x32xbf16, #tpu.memory_space<vmem>>, vector<16x32xbf16>
    %cst_14 = arith.constant dense<0.000000e+00> : vector<16x128xf32>
    %19 = tpu.matmul %18, %17, %cst_14 {dimension_numbers = #tpu.dot_dimension_numbers<[1], [0], [0], [1], [0, 0, 1, 1], [], []>} : vector<16x32xbf16>, vector<32x128xbf16>, vector<16x128xf32> -> vector<16x128xf32>
    %20 = arith.truncf %19 : vector<16x128xf32> to vector<16x128xbf16>
    %c0_15 = arith.constant 0 : index
    %c0_16 = arith.constant 0 : index
    %21 = vector.load %arg7[%c0_15, %c0_16] : memref<16x1xbf16, #tpu.memory_space<vmem>>, vector<16x1xbf16>
    %22 = vector.broadcast %21 : vector<16x1xbf16> to vector<16x128xbf16>
    %23 = arith.addf %20, %22 : vector<16x128xbf16>
    %cst_17 = arith.constant 0.000000e+00 : bf16
    %24 = vector.broadcast %cst_17 : bf16 to vector<16x128xbf16>
    %25 = arith.maximumf %23, %24 : vector<16x128xbf16>
    %c0_18 = arith.constant 0 : index
    %c0_19 = arith.constant 0 : index
    %26 = vector.load %arg8[%c0_18, %c0_19] : memref<40x16xbf16, #tpu.memory_space<vmem>>, vector<40x16xbf16>
    %cst_20 = arith.constant dense<0.000000e+00> : vector<40x128xf32>
    %27 = tpu.matmul %26, %25, %cst_20 {dimension_numbers = #tpu.dot_dimension_numbers<[1], [0], [0], [1], [0, 0, 1, 1], [], []>} : vector<40x16xbf16>, vector<16x128xbf16>, vector<40x128xf32> -> vector<40x128xf32>
    %28 = arith.truncf %27 : vector<40x128xf32> to vector<40x128xbf16>
    %c0_21 = arith.constant 0 : index
    %c0_22 = arith.constant 0 : index
    %29 = vector.load %arg9[%c0_21, %c0_22] : memref<40x1xbf16, #tpu.memory_space<vmem>>, vector<40x1xbf16>
    %30 = vector.broadcast %29 : vector<40x1xbf16> to vector<40x128xbf16>
    %31 = arith.addf %28, %30 : vector<40x128xbf16>
    %cst_23 = arith.constant 0.000000e+00 : bf16
    %32 = vector.broadcast %cst_23 : bf16 to vector<40x128xbf16>
    %33 = arith.maximumf %31, %32 : vector<40x128xbf16>
    %34 = arith.extf %33 : vector<40x128xbf16> to vector<40x128xf32>
    %c0_24 = arith.constant 0 : index
    %c0_25 = arith.constant 0 : index
    %35 = vector.load %arg10[%c0_24, %c0_25] : memref<40x1xf32, #tpu.memory_space<vmem>>, vector<40x1xf32>
    %36 = vector.broadcast %35 : vector<40x1xf32> to vector<40x128xf32>
    %37 = arith.mulf %34, %36 : vector<40x128xf32>
    %cst_26 = arith.constant dense<0.000000e+00> : vector<128xf32>
    %38 = vector.multi_reduction <add>, %37, %cst_26 [0] : vector<40x128xf32> to vector<128xf32>
    %39 = vector.shape_cast %38 : vector<128xf32> to vector<1x128xf32>
    %c0_27 = arith.constant 0 : index
    %c0_28 = arith.constant 0 : index
    %40 = vector.load %arg11[%c0_27, %c0_28] : memref<1x1xf32, #tpu.memory_space<vmem>>, vector<1x1xf32>
    %41 = vector.broadcast %40 : vector<1x1xf32> to vector<1x128xf32>
    %42 = arith.addf %39, %41 : vector<1x128xf32>
    %c0_29 = arith.constant 0 : index
    %c0_30 = arith.constant 0 : index
    %43 = vector.load %arg12[%c0_29, %c0_30] : memref<1x128xf32, #tpu.memory_space<vmem>>, vector<1x128xf32>
    tpu.vector_store %arg12[%c0_29, %c0_30], %42 {strides = array<i32>} : memref<1x128xf32, #tpu.memory_space<vmem>>, vector<1x128xf32>,
    return
  }
  func.func @transform_0(%arg0: i32) -> (i32, i32) {
    %c0_i32 = arith.constant 0 : i32
    %c0_i32_0 = arith.constant 0 : i32
    return %arg0, %c0_i32 : i32, i32
  }
  func.func @transform_1(%arg0: i32) -> (i32, i32) {
    %c0_i32 = arith.constant 0 : i32
    %c0_i32_0 = arith.constant 0 : i32
    %c0_i32_1 = arith.constant 0 : i32
    return %c0_i32, %c0_i32_0 : i32, i32
  }
  func.func @transform_2(%arg0: i32) -> (i32, i32) {
    %c0_i32 = arith.constant 0 : i32
    %c0_i32_0 = arith.constant 0 : i32
    %c0_i32_1 = arith.constant 0 : i32
    return %c0_i32, %c0_i32_0 : i32, i32
  }
  func.func @transform_3(%arg0: i32) -> (i32, i32) {
    %c0_i32 = arith.constant 0 : i32
    %c0_i32_0 = arith.constant 0 : i32
    %c0_i32_1 = arith.constant 0 : i32
    return %c0_i32, %c0_i32_0 : i32, i32
  }
  func.func @transform_4(%arg0: i32) -> (i32, i32) {
    %c0_i32 = arith.constant 0 : i32
    %c0_i32_0 = arith.constant 0 : i32
    %c0_i32_1 = arith.constant 0 : i32
    return %c0_i32, %c0_i32_0 : i32, i32
  }
  func.func @transform_5(%arg0: i32) -> (i32, i32) {
    %c0_i32 = arith.constant 0 : i32
    %c0_i32_0 = arith.constant 0 : i32
    %c0_i32_1 = arith.constant 0 : i32
    return %c0_i32, %c0_i32_0 : i32, i32
  }
  func.func @transform_6(%arg0: i32) -> (i32, i32) {
    %c0_i32 = arith.constant 0 : i32
    %c0_i32_0 = arith.constant 0 : i32
    %c0_i32_1 = arith.constant 0 : i32
    return %c0_i32, %c0_i32_0 : i32, i32
  }
  func.func @transform_7(%arg0: i32) -> (i32, i32) {
    %c0_i32 = arith.constant 0 : i32
    %c0_i32_0 = arith.constant 0 : i32
    %c0_i32_1 = arith.constant 0 : i32
    return %c0_i32, %c0_i32_0 : i32, i32
  }
  func.func @transform_8(%arg0: i32) -> (i32, i32) {
    %c0_i32 = arith.constant 0 : i32
    %c0_i32_0 = arith.constant 0 : i32
    %c0_i32_1 = arith.constant 0 : i32
    return %c0_i32, %c0_i32_0 : i32, i32
  }
  func.func @transform_9(%arg0: i32) -> (i32, i32) {
    %c0_i32 = arith.constant 0 : i32
    %c0_i32_0 = arith.constant 0 : i32
    %c0_i32_1 = arith.constant 0 : i32
    return %c0_i32, %c0_i32_0 : i32, i32
  }
  func.func @transform_10(%arg0: i32) -> (i32, i32) {
    %c0_i32 = arith.constant 0 : i32
    %c0_i32_0 = arith.constant 0 : i32
    %c0_i32_1 = arith.constant 0 : i32
    return %c0_i32, %c0_i32_0 : i32, i32
  }
  func.func @transform_11(%arg0: i32) -> (i32, i32) {
    %c0_i32 = arith.constant 0 : i32
    %c0_i32_0 = arith.constant 0 : i32
    return %c0_i32, %arg0 : i32, i32
  }
}

</mosaic_0001>

<bundles_post_ra>
// kernel: regression_forward.1
= control target key start
LH: loop header
LB: loop body
LE: loop exit
PB: predicated region body
PF: predicated region fallthrough
CT: control target
= control target key end

     0   :  { %s4416_s0 = inlined_call_operand.vmem [shape: f32[256,136], index: 0, kind: input, shape index: {}]   ;;  %s4417_s1 = inlined_call_operand.vmem [shape: bf16[480,136], index: 1, kind: input, shape index: {}]   ;;  %s4418_s2 = inlined_call_operand.vmem [shape: bf16[480,1], index: 2, kind: input, shape index: {}]   ;;  %s4419_s3 = inlined_call_operand.vmem [shape: bf16[32,480], index: 3, kind: input, shape index: {}]   ;;  %s4420_s4 = inlined_call_operand.vmem [shape: bf16[32,1], index: 4, kind: input, shape index: {}]   ;;  %s4421_s5 = inlined_call_operand.vmem [shape: bf16[16,32], index: 5, kind: input, shape index: {}]   ;;  %s4422_s6 = inlined_call_operand.vmem [shape: bf16[16,1], index: 6, kind: input, shape index: {}]   ;;  %s4423_s7 = inlined_call_operand.vmem [shape: bf16[40,16], index: 7, kind: input, shape index: {}]   ;;  %s4424_s8 = inlined_call_operand.vmem [shape: bf16[40,1], index: 8, kind: input, shape index: {}]   ;;  %s4425_s9 = inlined_call_operand.vmem [shape: f32[40,1], index: 9, kind: input, shape index: {}]   ;;  %s4426_s10 = inlined_call_operand.<no memory space> [shape: f32[1,1], index: 10, kind: input, shape index: {}]   ;;  %s4427_s11 = inlined_call_operand.hbm [shape: f32[1,256], index: 11, kind: output, shape index: {}]  }
   0x1   :  { %4456 = sst [smem:[#allocation32_spill]] %s4416_s0  ;;  %v16_v0 = vstv %s4426_s10 }
   0x2   :  { %17 = vst [vmem:[#allocation2] sm:$0x1] %v16_v0 }
   0x3   :  { %18 = vsyncpa [#allocation4], 0 }
   0x4   :  { %20 = vsyncpa [#allocation4 + $0x1], 0  ;;  %s3337_s19 = smov 0   ;;  %s3339_s20 = smov 0  }
   0x5   :  { %s3341_s21 = smov 0   ;;  %s3343_s22 = smov 0  }
   0x6 LB: > { %s2819_s10 = sadd.s32 4294967295, %s3267_s22   ;;  %s2820_s23 = sadd.s32 4294967294, %s3267_s22   ;;  %s3267_s22 = sphi %s3343_s22, %s4534_s22   ;;  %s3263_s21 = sphi %s3341_s21, %s4533_s21   ;;  %s3259_s20 = sphi %s3339_s20, %s4532_s20   ;;  %s3255_s19 = sphi %s3337_s19, %s4531_s19  }
   0x7   : > { %s3360_s24 = sadd.s32 1, %s3267_s22   ;;  %s269_s25 = sadd.s32 1, %s3263_s21 }
   0x8   : > { %s266_s26 = ssub.s32 %s3267_s22, %s3360_s24  ;;  %p279_p0 = scmp.ne.s32.totalorder %s3263_s21, %s3259_s20 }
   0x9   : > { %p267_p1 = scmp.eq.s32.totalorder %s266_s26, 0  ;;  %p280_p2 = scmp.eq.s32.totalorder %s2819_s10, 1 }
   0xa   : > { %p285_p3 = scmp.ne.s32.totalorder %s3259_s20, %s3255_s19  ;;  %p286_p4 = scmp.eq.s32.totalorder %s2820_s23, 1 }
   0xb   : > { %s3370_s27 = scalar_select %p267_p1, %s3263_s21, %s269_s25  }
   0xc   : > { %p3372_p5 = por %p280_p2, %p279_p0  ;;  %p3376_p6 = por %p286_p4, %p285_p3 }
   0xd   : > { %p2823_p7 = scmp.ge.s32.totalorder %s3267_s22, 1  ;;  %p344_p8 = scmp.lt.s32.totalorder %s3267_s22, 3 }
   0xf   : > { %p345_p9 = pnand %p2823_p7, %p344_p8 }
  0x11   : > { %348 = sbr.rel (%p345_p9) target bundleno = 1188 (0x4a4), region = 64 }
  0x16   : > { %s3382_s30 = sshll.u32 %s2819_s10, 4  ;;  %v3103_v1 = vld [vmem:[%s4417_s1 + $0x4] ss:$8 sps:$4 sm:$0xff]   ;;  %vm770_vm0 = vcmask 64512   ;;  %v4428_v2 = vmov 0   ;;  %s4459_s0 = sld [smem:[#allocation32_spill]] }
  0x17   : > { %p385_p10 = scmp.lt.s32.totalorder %s3382_s30, 31  ;;  %3100 = vset.pattern.permute.xlu1 %v4428_v2  ;;  %3099 = vset.pattern.permute.xlu0 %v4428_v2  ;;  %v1218_v3 = vld [vmem:[%s4418_s2 + $0x78] sm:$0xf]  ;;  %v1219_v5 = vld [vmem:[%s4418_s2 + $0x7c] sm:$0xf]  ;;  %vm2254_vm1 = vcmask 785408  }
  0x18   : > { %2895 = vmatprep.mubr.msk.bf16.mxu0 %vm770_vm0, %v3103_v1  ;;  %1610 = vperm.xlu0 %3099, %v1218_v3   ;;  %v1202_v4 = vld [vmem:[%s4418_s2 + $0x38] sm:$0xf]  ;;  %v1203_v6 = vld [vmem:[%s4418_s2 + $0x3c] sm:$0xf]  ;;  %v1216_v16 = vld [vmem:[%s4418_s2 + $0x70] sm:$0xf] }
  0x19   : > { %s386_s16 = scalar_select %p385_p10, %s3382_s30, 31  ;;  %1418 = vperm.xlu1 %3100, %v1202_v4   ;;  %v1217_v17 = vld [vmem:[%s4418_s2 + $0x74] sm:$0xf]  ;;  %v1200_v23 = vld [vmem:[%s4418_s2 + $0x30] sm:$0xf]  ;;  %vm3272_vm2 = vmmov 0  }
  0x1a   : > { %v1201_v22 = vld [vmem:[%s4418_s2 + $0x34] sm:$0xf]  ;;  %v1215_v26 = vld [vmem:[%s4418_s2 + $0x6c] sm:$0xf]  ;;  %v1214_v28 = vld [vmem:[%s4418_s2 + $0x68] sm:$0xf] }
  0x1b   : > { %s2982_s25 = sshll.u32 %s386_s16, 4  ;;  %v1199_v32 = vld [vmem:[%s4418_s2 + $0x2c] sm:$0xf]  ;;  %v1198_v33 = vld [vmem:[%s4418_s2 + $0x28] sm:$0xf]  ;;  %vm2436_vm3 = vcmask 261120  }
  0x1c   : > { %s3407_s15 = scalar_lea.vmem %s4459_s0, %s2982_s25  ;;  %1622 = vperm.xlu0 %3099, %v1219_v5   ;;  %v1213_v36 = vld [vmem:[%s4418_s2 + $0x64] sm:$0xf]  ;;  %v1212_v37 = vld [vmem:[%s4418_s2 + $0x60] sm:$0xf]  ;;  %v1211_v47 = vld [vmem:[%s4418_s2 + $0x5c] sm:$0xf] }
  0x1d   : > { %v421_v7 = vld [vmem:[%s3407_s15 + $0xe8] sm:$0xff]  ;;  %v423_v8 = vld [vmem:[%s3407_s15 + $0xf8] sm:$0xff]  ;;  %v420_v9 = vld [vmem:[%s3407_s15 + $0xe0] sm:$0xff]  ;;  %1430 = vperm.xlu1 %3100, %v1203_v6   ;;  %vm2534_vm4 = vcmask 130048   ;;  %s382_s25 = sand.u32 1, %s3259_s20   ;;  %s3273_s18 = smov [#allocation3]  }
  0x1e   : > { %v439_v10 = vpack.c.bf16 %v423_v8, %v421_v7  ;;  %v422_v11 = vld [vmem:[%s3407_s15 + $0xf0] sm:$0xff]  ;;  %v417_v12 = vld [vmem:[%s3407_s15 + $0xc8] sm:$0xff]  ;;  %v419_v13 = vld [vmem:[%s3407_s15 + $0xd8] sm:$0xff]  ;;  %s383_s26 = scalar_lea.vmem [#allocation3], %s382_s25  ;;  %s2753_s16 = scalar_lea.sflag [#allocation4], %s382_s25 }
  0x1f   : > { %v438_v14 = vpack.c.bf16 %v422_v11, %v420_v9  ;;  %v437_v15 = vpack.c.bf16 %v419_v13, %v417_v12  ;;  %v416_v18 = vld [vmem:[%s3407_s15 + $0xc0] sm:$0xff]  ;;  %v418_v19 = vld [vmem:[%s3407_s15 + $0xd0] sm:$0xff]  ;;  %v413_v20 = vld [vmem:[%s3407_s15 + $0xa8] sm:$0xff]  ;;  %s2765_s12 = sshll.u32 %s383_s26, 4  ;;  %s3211_s10 = sshll.u32 %s3273_s18, 4  ;;  %s2766_s12 = int_to_ptr.vmem [resolvable:$true] %s2765_s12  ;;  %s3212_s10 = int_to_ptr.vmem [resolvable:$false] %s3211_s10 }
  0x20   : > { %2887 = vmatprep.subr.msk.bf16.mxu0 %vm770_vm0, %v439_v10  ;;  %3040 = vmatprep.subr.msk.bf16.mxu1 %vm770_vm0, %v439_v10  ;;  %v415_v21 = vld [vmem:[%s3407_s15 + $0xb8] sm:$0xff]  ;;  %v436_v24 = vpack.c.bf16 %v418_v19, %v416_v18  ;;  %v412_v27 = vld [vmem:[%s3407_s15 + $0xa0] sm:$0xff]  ;;  %v414_v29 = vld [vmem:[%s3407_s15 + $0xb0] sm:$0xff]  ;;  %s3207_s17 = scalar_lea.vmem %s2766_s12, 16  ;;  %s3213_s23 = scalar_lea.vmem %s3212_s10, 32 }
  0x21   : > { %886 = vmatpush1.bf16.xpose.msra.mxu0 %v438_v14  ;;  %3048 = vmatpush1.bf16.xpose.msra.mxu1 %v438_v14  ;;  %v435_v25 = vpack.c.bf16 %v415_v21, %v413_v20  ;;  %v409_v30 = vld [vmem:[%s3407_s15 + $0x88] sm:$0xff]  ;;  %v411_v31 = vld [vmem:[%s3407_s15 + $0x98] sm:$0xff]  ;;  %v434_v34 = vpack.c.bf16 %v414_v29, %v412_v27  ;;  %v408_v38 = vld [vmem:[%s3407_s15 + $0x80] sm:$0xff]  ;;  %p3208_p11 = scmp.ne.s32.totalorder %s2766_s12, %s3207_s17  ;;  %p3214_p0 = scmp.lt.s32.totalorder %s2766_s12, %s3212_s10 }
  0x22   : > { %2888 = vmatprep.subr.msk.bf16.mxu0 %vm770_vm0, %v437_v15  ;;  %3041 = vmatprep.subr.msk.bf16.mxu1 %vm770_vm0, %v437_v15  ;;  %v433_v35 = vpack.c.bf16 %v411_v31, %v409_v30  ;;  %v410_v39 = vld [vmem:[%s3407_s15 + $0x90] sm:$0xff]  ;;  %v405_v40 = vld [vmem:[%s3407_s15 + $0x68] sm:$0xff]  ;;  %v407_v41 = vld [vmem:[%s3407_s15 + $0x78] sm:$0xff]  ;;  %p3215_p1 = scmp.lt.s32.totalorder %s3213_s23, %s3207_s17 }
  0x23   : > { %1586 = vperm.xlu0 %3099, %v1216_v16   ;;  %1598 = vperm.xlu1 %3100, %v1217_v17   ;;  %v1197_v42 = vld [vmem:[%s4418_s2 + $0x24] sm:$0xf]  ;;  %v1196_v43 = vld [vmem:[%s4418_s2 + $0x20] sm:$0xf]  ;;  %v432_v45 = vpack.c.bf16 %v410_v39, %v408_v38  ;;  %v431_v46 = vpack.c.bf16 %v407_v41, %v405_v40  ;;  %v1210_v48 = vld [vmem:[%s4418_s2 + $0x58] sm:$0xf]  ;;  %p3209_p12 = pnand %p3208_p11, %p3372_p5 }
  0x24   : > { %v3126_v44 = vld [vmem:[%s4417_s1 + $0x164] ss:$8 sps:$4 sm:$0xff]   ;;  %v406_v50 = vld [vmem:[%s3407_s15 + $0x70] sm:$0xff]  ;;  %v403_v52 = vld [vmem:[%s3407_s15 + $0x58] sm:$0xff]  ;;  %p3216_p2 = por %p3215_p1, %p3214_p0 }
  0x25   : > { %2917 = vmatprep.mubr.msk.bf16.mxu1 %vm770_vm0, %v3126_v44  ;;  %v404_v49 = vld [vmem:[%s3407_s15 + $0x60] sm:$0xff]  ;;  %v401_v51 = vld [vmem:[%s3407_s15 + $0x48] sm:$0xff]  ;;  %v1195_v53 = vld [vmem:[%s4418_s2 + $0x1c] sm:$0xf]  ;;  %p3210_p13 = pneg %p3209_p12 }
  0x26   : > { %v1194_v54 = vld [vmem:[%s4418_s2 + $0x18] sm:$0xf]  ;;  %v430_v55 = vpack.c.bf16 %v406_v50, %v404_v49  ;;  %v429_v56 = vpack.c.bf16 %v403_v52, %v401_v51  ;;  %v1209_v57 = vld [vmem:[%s4418_s2 + $0x54] sm:$0xf]  ;;  %v1208_v58 = vld [vmem:[%s4418_s2 + $0x50] sm:$0xf] }
  0x27   : > { %1406 = vperm.xlu1 %3100, %v1201_v22   ;;  %1394 = vperm.xlu0 %3099, %v1200_v23   ;;  %v400_v59 = vld [vmem:[%s3407_s15 + $0x40] sm:$0xff]  ;;  %v402_v60 = vld [vmem:[%s3407_s15 + $0x50] sm:$0xff]  ;;  %v397_v61 = vld [vmem:[%s3407_s15 + $0x28] sm:$0xff]  ;;  %p3217_p3 = pnand %p3216_p2, %p3210_p13 }
  0x28   : > { %v399_v62 = vld [vmem:[%s3407_s15 + $0x38] sm:$0xff]  ;;  %v1193_v63 = vld [vmem:[%s4418_s2 + $0x14] sm:$0xf]  ;;  %v1192_v0 = vld [vmem:[%s4418_s2 + $0x10] sm:$0xf]  ;;  %v428_v1 = vpack.c.bf16 %v402_v60, %v400_v59 }
  0x29   : > { %888 = vmatpush1.bf16.xpose.msra.mxu0 %v436_v24  ;;  %3049 = vmatpush1.bf16.xpose.msra.mxu1 %v436_v24  ;;  %v427_v3 = vpack.c.bf16 %v399_v62, %v397_v61  ;;  %v1207_v4 = vld [vmem:[%s4418_s2 + $0x4c] sm:$0xf]  ;;  %v1206_v5 = vld [vmem:[%s4418_s2 + $0x48] sm:$0xf]  ;;  %v396_v6 = vld [vmem:[%s3407_s15 + $0x20] sm:$0xff] }
  0x2a   : > { %2889 = vmatprep.subr.msk.bf16.mxu0 %vm770_vm0, %v435_v25  ;;  %3042 = vmatprep.subr.msk.bf16.mxu1 %vm770_vm0, %v435_v25  ;;  %v398_v7 = vld [vmem:[%s3407_s15 + $0x30] sm:$0xff]  ;;  %v393_v8 = vld [vmem:[%s3407_s15 + $0x8] sm:$0xff]  ;;  %v395_v9 = vld [vmem:[%s3407_s15 + $0x18] sm:$0xff] }
  0x2b   : > { %1574 = vperm.xlu1 %3100, %v1215_v26   ;;  %1562 = vperm.xlu0 %3099, %v1214_v28   ;;  %v1191_v10 = vld [vmem:[%s4418_s2 + $0xc] sm:$0xf]  ;;  %v1190_v11 = vld [vmem:[%s4418_s2 + $0x8] sm:$0xf]  ;;  %v426_v12 = vpack.c.bf16 %v398_v7, %v396_v6  ;;  %v425_v13 = vpack.c.bf16 %v395_v9, %v393_v8  ;;  %v392_v14 = vld [vmem:[%s3407_s15] sm:$0xff] }
  0x2c   : > { %v1205_v15 = vld [vmem:[%s4418_s2 + $0x44] sm:$0xf]  ;;  %v1204_v16 = vld [vmem:[%s4418_s2 + $0x40] sm:$0xf]  ;;  %v394_v17 = vld [vmem:[%s3407_s15 + $0x10] sm:$0xff]  ;;  %s2763_s15 = scalar_lea.hbm %s4427_s11, %s3382_s30 }
  0x2d   : > { %v1189_v18 = vld [vmem:[%s4418_s2 + $0x4] sm:$0xf]  ;;  %v1188_v19 = vld [vmem:[%s4418_s2] sm:$0xf]  ;;  %v424_v20 = vpack.c.bf16 %v394_v17, %v392_v14  ;;  %v1234_v21 = vld [vmem:[%s4418_s2 + $0xb8] sm:$0xf] }
  0x2e   : > { %v1235_v22 = vld [vmem:[%s4418_s2 + $0xbc] sm:$0xf]  ;;  %v3101_v23 = vld [vmem:[%s4417_s1] ss:$8 sps:$4 sm:$0xff]   ;;  %v1232_v25 = vld [vmem:[%s4418_s2 + $0xb0] sm:$0xf] }
  0x2f   : > { %1382 = vperm.xlu1 %3100, %v1199_v32   ;;  %1370 = vperm.xlu0 %3099, %v1198_v33   ;;  %v3124_v24 = vld [vmem:[%s4417_s1 + $0x160] ss:$8 sps:$4 sm:$0xff]   ;;  %v1233_v26 = vld [vmem:[%s4418_s2 + $0xb4] sm:$0xf]  ;;  %v1231_v30 = vld [vmem:[%s4418_s2 + $0xac] sm:$0xf] }
  0x30   : > { %v3104_v27 = vld [vmem:[%s4417_s1 + $0x14] ss:$8 sps:$4 sm:$0xff]   ;;  %v1230_v29 = vld [vmem:[%s4418_s2 + $0xa8] sm:$0xf]  ;;  %v3106_v31 = vld [vmem:[%s4417_s1 + $0x10] ss:$8 sps:$4 sm:$0xff]  }
  0x31   : > { %890 = vmatpush1.bf16.xpose.msra.mxu0 %v434_v34  ;;  %3050 = vmatpush1.bf16.xpose.msra.mxu1 %v434_v34  ;;  %v3130_v28 = vld [vmem:[%s4417_s1 + $0x174] ss:$8 sps:$4 sm:$0xff]   ;;  %v3133_v32 = vld [vmem:[%s4417_s1 + $0x170] ss:$8 sps:$4 sm:$0xff]   ;;  %v1228_v33 = vld [vmem:[%s4418_s2 + $0xa0] sm:$0xf] }
  0x32   : > { %2890 = vmatprep.subr.msk.bf16.mxu0 %vm770_vm0, %v433_v35  ;;  %3043 = vmatprep.subr.msk.bf16.mxu1 %vm770_vm0, %v433_v35  ;;  %v1229_v34 = vld [vmem:[%s4418_s2 + $0xa4] sm:$0xf]  ;;  %v1227_v38 = vld [vmem:[%s4418_s2 + $0x9c] sm:$0xf]  ;;  %v3109_v39 = vld [vmem:[%s4417_s1 + $0x20] ss:$8 sps:$4 sm:$0xff]  }
  0x33   : > { %1550 = vperm.xlu1 %3100, %v1213_v36   ;;  %1538 = vperm.xlu0 %3099, %v1212_v37   ;;  %v3107_v35 = vld [vmem:[%s4417_s1 + $0x24] ss:$8 sps:$4 sm:$0xff]   ;;  %v1226_v37 = vld [vmem:[%s4418_s2 + $0x98] sm:$0xf]  ;;  %v3139_v40 = vld [vmem:[%s4417_s1 + $0x180] ss:$8 sps:$4 sm:$0xff]  }
  0x34   : > { %v3136_v36 = vld [vmem:[%s4417_s1 + $0x184] ss:$8 sps:$4 sm:$0xff]   ;;  %v1224_v41 = vld [vmem:[%s4418_s2 + $0x90] sm:$0xf]  ;;  %v3142_v44 = vld [vmem:[%s4417_s1 + $0x194] ss:$8 sps:$4 sm:$0xff]  }
  0x35   : > { %v1220_v49 = vld [vmem:[%s4418_s2 + $0x80] sm:$0xf]  ;;  %v1221_v50 = vld [vmem:[%s4418_s2 + $0x84] sm:$0xf]  ;;  %v3116_v59 = vld [vmem:[%s4417_s1 + $0x54] ss:$8 sps:$4 sm:$0xff]  }
  0x36   : > { %v3113_v51 = vld [vmem:[%s4417_s1 + $0x44] ss:$8 sps:$4 sm:$0xff]   ;;  %v3154_v60 = vld [vmem:[%s4417_s1 + $0x1b4] ss:$8 sps:$4 sm:$0xff]   ;;  %v1242_v61 = vld [vmem:[%s4418_s2 + $0xd8] sm:$0xf] }
  0x37   : > { %1358 = vperm.xlu1 %3100, %v1197_v42   ;;  %1346 = vperm.xlu0 %3099, %v1196_v43   ;;  %v1225_v42 = vld [vmem:[%s4418_s2 + $0x94] sm:$0xf]  ;;  %v3148_v52 = vld [vmem:[%s4417_s1 + $0x1a4] ss:$8 sps:$4 sm:$0xff]   ;;  %v1243_v62 = vld [vmem:[%s4418_s2 + $0xdc] sm:$0xf] }
  0x38   : > { %v3110_v43 = vld [vmem:[%s4417_s1 + $0x34] ss:$8 sps:$4 sm:$0xff]   ;;  %v1238_v6 = vld [vmem:[%s4418_s2 + $0xc8] sm:$0xf]  ;;  %v1239_v7 = vld [vmem:[%s4418_s2 + $0xcc] sm:$0xf] }
  0x39   : > { %892 = vmatpush1.bf16.xpose.msra.mxu0 %v432_v45  ;;  %3051 = vmatpush1.bf16.xpose.msra.mxu1 %v432_v45  ;;  %v1222_v45 = vld [vmem:[%s4418_s2 + $0x88] sm:$0xf]  ;;  %v3169_v17 = vld [vmem:[%s4417_s1 + $0x1d0] ss:$8 sps:$4 sm:$0xff]  }
  0x3a   : > { %2891 = vmatprep.subr.msk.bf16.mxu0 %vm770_vm0, %v431_v46  ;;  %3044 = vmatprep.subr.msk.bf16.mxu1 %vm770_vm0, %v431_v46  ;;  %v1223_v46 = vld [vmem:[%s4418_s2 + $0x8c] sm:$0xf]  ;;  %v3121_v8 = vld [vmem:[%s4417_s1 + $0x60] ss:$8 sps:$4 sm:$0xff]  }
  0x3b   : > { %1526 = vperm.xlu1 %3100, %v1211_v47   ;;  %1514 = vperm.xlu0 %3099, %v1210_v48   ;;  %v3112_v47 = vld [vmem:[%s4417_s1 + $0x30] ss:$8 sps:$4 sm:$0xff]   ;;  %v3163_v9 = vld [vmem:[%s4417_s1 + $0x1c0] ss:$8 sps:$4 sm:$0xff]  }
  0x3c   : > { %v3145_v48 = vld [vmem:[%s4417_s1 + $0x190] ss:$8 sps:$4 sm:$0xff]   ;;  %v2363_v14 = vld [vmem:[%s4420_s4 + $0x8] sm:$0xf] }
  0x3f   : > { %1334 = vperm.xlu1 %3100, %v1195_v53   ;;  %1322 = vperm.xlu0 %3099, %v1194_v54   ;;  %v1246_v53 = vld [vmem:[%s4418_s2 + $0xe8] sm:$0xf]  ;;  %v1247_v54 = vld [vmem:[%s4418_s2 + $0xec] sm:$0xf] }
  0x41   : > { %894 = vmatpush1.bf16.xpose.msra.mxu0 %v430_v55  ;;  %3052 = vmatpush1.bf16.xpose.msra.mxu1 %v430_v55  ;;  %v3115_v55 = vld [vmem:[%s4417_s1 + $0x40] ss:$8 sps:$4 sm:$0xff]  }
  0x42   : > { %2892 = vmatprep.subr.msk.bf16.mxu0 %vm770_vm0, %v429_v56  ;;  %3045 = vmatprep.subr.msk.bf16.mxu1 %vm770_vm0, %v429_v56  ;;  %v3151_v56 = vld [vmem:[%s4417_s1 + $0x1a0] ss:$8 sps:$4 sm:$0xff]  }
  0x43   : > { %1502 = vperm.xlu1 %3100, %v1209_v57   ;;  %1490 = vperm.xlu0 %3099, %v1208_v58   ;;  %v1244_v57 = vld [vmem:[%s4418_s2 + $0xe0] sm:$0xf]  ;;  %v1245_v58 = vld [vmem:[%s4418_s2 + $0xe4] sm:$0xf] }
  0x47   : > { %1310 = vperm.xlu1 %3100, %v1193_v63   ;;  %1298 = vperm.xlu0 %3099, %v1192_v0   ;;  %v3118_v63 = vld [vmem:[%s4417_s1 + $0x50] ss:$8 sps:$4 sm:$0xff]  }
  0x48   : > { %v3157_v0 = vld [vmem:[%s4417_s1 + $0x1b0] ss:$8 sps:$4 sm:$0xff]  }
  0x49   : > { %896 = vmatpush1.bf16.xpose.msra.mxu0 %v428_v1  ;;  %3053 = vmatpush1.bf16.xpose.msra.mxu1 %v428_v1  ;;  %v1240_v1 = vld [vmem:[%s4418_s2 + $0xd0] sm:$0xf] }
  0x4a   : > { %2893 = vmatprep.subr.msk.bf16.mxu0 %vm770_vm0, %v427_v3  ;;  %3046 = vmatprep.subr.msk.bf16.mxu1 %vm770_vm0, %v427_v3  ;;  %v1241_v3 = vld [vmem:[%s4418_s2 + $0xd4] sm:$0xf] }
  0x4b   : > { %1478 = vperm.xlu1 %3100, %v1207_v4   ;;  %1466 = vperm.xlu0 %3099, %v1206_v5   ;;  %v3119_v4 = vld [vmem:[%s4417_s1 + $0x64] ss:$8 sps:$4 sm:$0xff]  }
  0x4c   : > { %v3160_v5 = vld [vmem:[%s4417_s1 + $0x1c4] ss:$8 sps:$4 sm:$0xff]  }
  0x4f   : > { %1286 = vperm.xlu1 %3100, %v1191_v10   ;;  %1274 = vperm.xlu0 %3099, %v1190_v11   ;;  %v1236_v10 = vld [vmem:[%s4418_s2 + $0xc0] sm:$0xf]  ;;  %v1237_v11 = vld [vmem:[%s4418_s2 + $0xc4] sm:$0xf] }
  0x51   : > { %898 = vmatpush1.bf16.xpose.msra.mxu0 %v426_v12  ;;  %3054 = vmatpush1.bf16.xpose.msra.mxu1 %v426_v12  ;;  %v3122_v12 = vld [vmem:[%s4417_s1 + $0x74] ss:$8 sps:$4 sm:$0xff]  }
  0x52   : > { %2894 = vmatprep.subr.msk.bf16.mxu0 %vm770_vm0, %v425_v13  ;;  %3047 = vmatprep.subr.msk.bf16.mxu1 %vm770_vm0, %v425_v13  ;;  %v3166_v13 = vld [vmem:[%s4417_s1 + $0x1d4] ss:$8 sps:$4 sm:$0xff]  }
  0x53   : > { %1454 = vperm.xlu1 %3100, %v1205_v15   ;;  %1442 = vperm.xlu0 %3099, %v1204_v16   ;;  %v2364_v15 = vld [vmem:[%s4420_s4 + $0xc] sm:$0xf]  ;;  %v3127_v16 = vld [vmem:[%s4417_s1 + $0x70] ss:$8 sps:$4 sm:$0xff]  }
  0x57   : > { %1262 = vperm.xlu1 %3100, %v1189_v18   ;;  %1250 = vperm.xlu0 %3099, %v1188_v19   ;;  %v2361_v18 = vld [vmem:[%s4420_s4] sm:$0xf]  ;;  %v2362_v19 = vld [vmem:[%s4420_s4 + $0x4] sm:$0xf] }
  0x59   : > { %900 = vmatpush1.bf16.xpose.msra.mxu0 %v424_v20  ;;  %3055 = vmatpush1.bf16.xpose.msra.mxu1 %v424_v20  ;;  %v3128_v20 = vld [vmem:[%s4417_s1 + $0x84] ss:$8 sps:$4 sm:$0xff]  }
  0x5b   : > { %1802 = vperm.xlu0 %3099, %v1234_v21   ;;  %1814 = vperm.xlu1 %3100, %v1235_v22   ;;  %v2482_v21 = vld [vmem:[%s4422_s6] sm:$0xf]  ;;  %v2483_v22 = vld [vmem:[%s4422_s6 + $0x4] sm:$0xf] }
  0x5f   : > { %1778 = vperm.xlu0 %3099, %v1232_v25   ;;  %1790 = vperm.xlu1 %3100, %v1233_v26   ;;  %v2604_v25 = vld [vmem:[%s4424_s8 + $0x4] sm:$0xf]  ;;  %v3134_v26 = vld [vmem:[%s4417_s1 + $0x94] ss:$8 sps:$4 sm:$0xff]  }
  0x60   : > { %918 = vmatmul.mubr.bf16.vlgmr.msra.gmra.mxu0 %v3101_v23  ;;  %1094 = vmatmul.mubr.bf16.vlgmr.msra.gmra.mxu1 %v3124_v24  ;;  %v3132_v23 = vld [vmem:[%s4417_s1 + $0x80] ss:$8 sps:$4 sm:$0xff]  }
  0x61   : > { %2896 = vmatprep.mubr.msk.bf16.mxu0 %vm770_vm0, %v3104_v27  ;;  %2918 = vmatprep.mubr.msk.bf16.mxu1 %vm770_vm0, %v3130_v28  ;;  %v2603_v24 = vld [vmem:[%s4424_s8] sm:$0xf]  ;;  %v2605_v27 = vld [vmem:[%s4424_s8 + $0x8] sm:$0xf]  ;;  %v2606_v28 = vld [vmem:[%s4424_s8 + $0xc] sm:$0xf] }
  0x63   : > { %1754 = vperm.xlu0 %3099, %v1230_v29   ;;  %1766 = vperm.xlu1 %3100, %v1231_v30   ;;  %v3138_v29 = vld [vmem:[%s4417_s1 + $0x90] ss:$8 sps:$4 sm:$0xff]  }
  0x64   : > { %v2607_v30 = vld [vmem:[%s4424_s8 + $0x10] sm:$0xf] }
  0x67   : > { %1730 = vperm.xlu0 %3099, %v1228_v33   ;;  %1742 = vperm.xlu1 %3100, %v1229_v34   ;;  %v2696_v33 = vld [vmem:[%s4425_s9 + $0x8] sm:$0xff]  ;;  %v2697_v34 = vld [vmem:[%s4425_s9 + $0x10] sm:$0xff] }
  0x68   : > { %926 = vmatmul.mubr.bf16.gmra.mxu0 %v3106_v31  ;;  %1102 = vmatmul.mubr.bf16.gmra.mxu1 %v3133_v32  ;;  %v2695_v31 = vld [vmem:[%s4425_s9] sm:$0xff] }
  0x69   : > { %2897 = vmatprep.mubr.msk.bf16.mxu0 %vm770_vm0, %v3107_v35  ;;  %2919 = vmatprep.mubr.msk.bf16.mxu1 %vm770_vm0, %v3136_v36  ;;  %v3140_v32 = vld [vmem:[%s4417_s1 + $0xa4] ss:$8 sps:$4 sm:$0xff]   ;;  %v3144_v35 = vld [vmem:[%s4417_s1 + $0xa0] ss:$8 sps:$4 sm:$0xff]   ;;  %v2698_v36 = vld [vmem:[%s4425_s9 + $0x18] sm:$0xff] }
  0x6b   : > { %1706 = vperm.xlu0 %3099, %v1226_v37   ;;  %1718 = vperm.xlu1 %3100, %v1227_v38   ;;  %v2699_v37 = vld [vmem:[%s4425_s9 + $0x20] sm:$0xff]  ;;  %v3146_v38 = vld [vmem:[%s4417_s1 + $0xb4] ss:$8 sps:$4 sm:$0xff]  }
  0x6f   : > { %1682 = vperm.xlu0 %3099, %v1224_v41   ;;  %1694 = vperm.xlu1 %3100, %v1225_v42   ;;  %v3152_v41 = vld [vmem:[%s4417_s1 + $0xc4] ss:$8 sps:$4 sm:$0xff]   ;;  %v3156_v42 = vld [vmem:[%s4417_s1 + $0xc0] ss:$8 sps:$4 sm:$0xff]  }
  0x70   : > { %934 = vmatmul.mubr.bf16.gmra.mxu0 %v3109_v39  ;;  %1110 = vmatmul.mubr.bf16.gmra.mxu1 %v3139_v40  ;;  %v2740_v39 = vld [vmem:[#allocation2] sm:$0x1]  ;;  %v3150_v40 = vld [vmem:[%s4417_s1 + $0xb0] ss:$8 sps:$4 sm:$0xff]  }
  0x71   : > { %2898 = vmatprep.mubr.msk.bf16.mxu0 %vm770_vm0, %v3110_v43  ;;  %2920 = vmatprep.mubr.msk.bf16.mxu1 %vm770_vm0, %v3142_v44  ;;  %v3158_v43 = vld [vmem:[%s4417_s1 + $0xd4] ss:$8 sps:$4 sm:$0xff]   ;;  %v3162_v44 = vld [vmem:[%s4417_s1 + $0xd0] ss:$8 sps:$4 sm:$0xff]  }
  0x73   : > { %1658 = vperm.xlu0 %3099, %v1222_v45   ;;  %1670 = vperm.xlu1 %3100, %v1223_v46   ;;  %v3164_v45 = vld [vmem:[%s4417_s1 + $0xe4] ss:$8 sps:$4 sm:$0xff]   ;;  %v3168_v46 = vld [vmem:[%s4417_s1 + $0xe0] ss:$8 sps:$4 sm:$0xff]  }
  0x77   : > { %1634 = vperm.xlu0 %3099, %v1220_v49   ;;  %1646 = vperm.xlu1 %3100, %v1221_v50   ;;  %v3173_v49 = vld [vmem:[%s4417_s1 + $0x104] ss:$8 sps:$4 sm:$0xff]   ;;  %v3175_v50 = vld [vmem:[%s4417_s1 + $0x100] ss:$8 sps:$4 sm:$0xff]  }
  0x78   : > { %942 = vmatmul.mubr.bf16.gmra.mxu0 %v3112_v47  ;;  %1118 = vmatmul.mubr.bf16.gmra.mxu1 %v3145_v48  ;;  %v3170_v47 = vld [vmem:[%s4417_s1 + $0xf4] ss:$8 sps:$4 sm:$0xff]   ;;  %v3172_v48 = vld [vmem:[%s4417_s1 + $0xf0] ss:$8 sps:$4 sm:$0xff]  }
  0x79   : > { %2899 = vmatprep.mubr.msk.bf16.mxu0 %vm770_vm0, %v3113_v51  ;;  %2921 = vmatprep.mubr.msk.bf16.mxu1 %vm770_vm0, %v3148_v52  ;;  %v3176_v51 = vld [vmem:[%s4417_s1 + $0x114] ss:$8 sps:$4 sm:$0xff]   ;;  %v3178_v52 = vld [vmem:[%s4417_s1 + $0x110] ss:$8 sps:$4 sm:$0xff]  }
  0x7b   : > { %1946 = vperm.xlu0 %3099, %v1246_v53   ;;  %1958 = vperm.xlu1 %3100, %v1247_v54   ;;  %v3179_v53 = vld [vmem:[%s4417_s1 + $0x124] ss:$8 sps:$4 sm:$0xff]   ;;  %v3181_v54 = vld [vmem:[%s4417_s1 + $0x120] ss:$8 sps:$4 sm:$0xff]  }
  0x7f   : > { %1922 = vperm.xlu0 %3099, %v1244_v57   ;;  %1934 = vperm.xlu1 %3100, %v1245_v58   ;;  %v3185_v57 = vld [vmem:[%s4417_s1 + $0x144] ss:$8 sps:$4 sm:$0xff]   ;;  %v3187_v58 = vld [vmem:[%s4417_s1 + $0x140] ss:$8 sps:$4 sm:$0xff]  }
  0x80   : > { %950 = vmatmul.mubr.bf16.gmra.mxu0 %v3115_v55  ;;  %1126 = vmatmul.mubr.bf16.gmra.mxu1 %v3151_v56  ;;  %v3182_v55 = vld [vmem:[%s4417_s1 + $0x134] ss:$8 sps:$4 sm:$0xff]   ;;  %v3184_v56 = vld [vmem:[%s4417_s1 + $0x130] ss:$8 sps:$4 sm:$0xff]  }
  0x81   : > { %2900 = vmatprep.mubr.msk.bf16.mxu0 %vm770_vm0, %v3116_v59  ;;  %2922 = vmatprep.mubr.msk.bf16.mxu1 %vm770_vm0, %v3154_v60  ;;  %v3188_v59 = vld [vmem:[%s4417_s1 + $0x154] ss:$8 sps:$4 sm:$0xff]   ;;  %v3190_v60 = vld [vmem:[%s4417_s1 + $0x150] ss:$8 sps:$4 sm:$0xff]  }
  0x83   : > { %1898 = vperm.xlu0 %3099, %v1242_v61   ;;  %1910 = vperm.xlu1 %3100, %v1243_v62  }
  0x87   : > { %1874 = vperm.xlu0 %3099, %v1240_v1   ;;  %1886 = vperm.xlu1 %3100, %v1241_v3  }
  0x88   : > { %958 = vmatmul.mubr.bf16.gmra.mxu0 %v3118_v63  ;;  %1134 = vmatmul.mubr.bf16.gmra.mxu1 %v3157_v0 }
  0x89   : > { %2901 = vmatprep.mubr.msk.bf16.mxu0 %vm770_vm0, %v3119_v4  ;;  %2923 = vmatprep.mubr.msk.bf16.mxu1 %vm770_vm0, %v3160_v5 }
  0x8b   : > { %1850 = vperm.xlu0 %3099, %v1238_v6   ;;  %1862 = vperm.xlu1 %3100, %v1239_v7  }
  0x8f   : > { %1826 = vperm.xlu0 %3099, %v1236_v10   ;;  %1838 = vperm.xlu1 %3100, %v1237_v11  }
  0x90   : > { %966 = vmatmul.mubr.bf16.gmra.mxu0 %v3121_v8  ;;  %1142 = vmatmul.mubr.bf16.gmra.mxu1 %v3163_v9 }
  0x91   : > { %2902 = vmatprep.mubr.msk.bf16.mxu0 %vm770_vm0, %v3122_v12  ;;  %2924 = vmatprep.mubr.msk.bf16.mxu1 %vm770_vm0, %v3166_v13 }
  0x93   : > { %2391 = vperm.xlu0 %3099, %v2363_v14   ;;  %2403 = vperm.xlu1 %3100, %v2364_v15  }
  0x97   : > { %2367 = vperm.xlu0 %3099, %v2361_v18   ;;  %2379 = vperm.xlu1 %3100, %v2362_v19  }
  0x98   : > { %974 = vmatmul.mubr.bf16.gmra.mxu0 %v3127_v16  ;;  %1150 = vmatmul.mubr.bf16.gmra.mxu1 %v3169_v17 }
  0x99   : > { %2903 = vmatprep.mubr.msk.bf16.mxu0 %vm770_vm0, %v3128_v20 }
  0x9b   : > { %2486 = vperm.xlu0 %3099, %v2482_v21   ;;  %2498 = vperm.xlu1 %3100, %v2483_v22  }
  0x9f   : > { %2610 = vperm.xlu0 %3099, %v2603_v24   ;;  %2622 = vperm.xlu1 %3100, %v2604_v25  }
  0xa0   : > { %982 = vmatmul.mubr.bf16.gmra.mxu0 %v3132_v23 }
  0xa1   : > { %2904 = vmatprep.mubr.msk.bf16.mxu0 %vm770_vm0, %v3134_v26 }
  0xa3   : > { %2634 = vperm.xlu0 %3099, %v2605_v27   ;;  %2646 = vperm.xlu1 %3100, %v2606_v28  }
  0xa7   : > { %2658 = vperm.xlu0 %3099, %v2607_v30   ;;  %2702 = vperm.xlu1 %3100, %v2695_v31  }
  0xa8   : > { %990 = vmatmul.mubr.bf16.gmra.mxu0 %v3138_v29 }
  0xa9   : > { %2905 = vmatprep.mubr.msk.bf16.mxu0 %vm770_vm0, %v3140_v32 }
  0xab   : > { %2707 = vperm.xlu0 %3099, %v2696_v33   ;;  %2712 = vperm.xlu1 %3100, %v2697_v34  }
  0xaf   : > { %2717 = vperm.xlu0 %3099, %v2698_v36   ;;  %2722 = vperm.xlu1 %3100, %v2699_v37  }
  0xb0   : > { %998 = vmatmul.mubr.bf16.gmra.mxu0 %v3144_v35 }
  0xb1   : > { %2906 = vmatprep.mubr.msk.bf16.mxu0 %vm770_vm0, %v3146_v38 }
  0xb3   : > { %2743 = vperm.xlu0 %3099, %v2740_v39  }
  0xb8   : > { %1006 = vmatmul.mubr.bf16.gmra.mxu0 %v3150_v40  ;;  %v3193_v40 = vld [vmem:[%s4419_s3 + $0x4] ss:$16 sps:$4 sm:$0xff]  }
  0xb9   : > { %2907 = vmatprep.mubr.msk.bf16.mxu0 %vm770_vm0, %v3152_v41  ;;  %2293 = vmatprep.mubr.bf16.mxu1 %v3193_v40 }
  0xc0   : > { %1014 = vmatmul.mubr.bf16.gmra.mxu0 %v3156_v42 }
  0xc1   : > { %2908 = vmatprep.mubr.msk.bf16.mxu0 %vm770_vm0, %v3158_v43  ;;  %v3934_v43 = vpop.permute.xlu0 %1610 }
  0xc8   : > { %1022 = vmatmul.mubr.bf16.gmra.mxu0 %v3162_v44  ;;  %v3936_v44 = vpop.permute.xlu1 %1418 }
  0xc9   : > { %2909 = vmatprep.mubr.msk.bf16.mxu0 %vm770_vm0, %v3164_v45 }
  0xd0   : > { %1030 = vmatmul.mubr.bf16.gmra.mxu0 %v3168_v46 }
  0xd1   : > { %2910 = vmatprep.mubr.msk.bf16.mxu0 %vm770_vm0, %v3170_v47 }
  0xd8   : > { %1038 = vmatmul.mubr.bf16.gmra.mxu0 %v3172_v48 }
  0xd9   : > { %2911 = vmatprep.mubr.msk.bf16.mxu0 %vm770_vm0, %v3173_v49 }
  0xe0   : > { %1046 = vmatmul.mubr.bf16.gmra.mxu0 %v3175_v50 }
  0xe1   : > { %2912 = vmatprep.mubr.msk.bf16.mxu0 %vm770_vm0, %v3176_v51 }
  0xe8   : > { %1054 = vmatmul.mubr.bf16.gmra.mxu0 %v3178_v52 }
  0xe9   : > { %2913 = vmatprep.mubr.msk.bf16.mxu0 %vm770_vm0, %v3179_v53  ;;  %v3950_v53 = vpop.permute.xlu0 %1622 }
  0xf0   : > { %1062 = vmatmul.mubr.bf16.gmra.mxu0 %v3181_v54  ;;  %v3952_v54 = vpop.permute.xlu1 %1430 }
  0xf1   : > { %2914 = vmatprep.mubr.msk.bf16.mxu0 %vm770_vm0, %v3182_v55 }
  0xf8   : > { %1070 = vmatmul.mubr.bf16.gmra.mxu0 %v3184_v56 }
  0xf9   : > { %2915 = vmatprep.mubr.msk.bf16.mxu0 %vm770_vm0, %v3185_v57 }
 0x100   : > { %1078 = vmatmul.mubr.bf16.gmra.mxu0 %v3187_v58 }
 0x101   : > { %2916 = vmatprep.mubr.msk.bf16.mxu0 %vm770_vm0, %v3188_v59 }
 0x108   : > { %1086 = vmatmul.mubr.bf16.gmra.mxu0 %v3190_v60 }
 0x120   : > { %v3879_v61 = vpop.f32.mrf.mxu0  ;;  %v3881_v62 = vpop.f32.mrf.mxu1 }
 0x121   : > { %4460 = vst [vmem:[#allocation6_spill] sm:$0xff] %v3879_v61  ;;  %4461 = vst [vmem:[#allocation7_spill] sm:$0xff] %v3881_v62 }
 0x122   : > { %v921_v63 = vpop.f32.mrf.mxu0  ;;  %v1097_v0 = vpop.f32.mrf.mxu1 }
 0x124   : > { %v3883_v1 = vpop.f32.mrf.mxu0  ;;  %v3885_v3 = vpop.f32.mrf.mxu1 }
 0x125   : > { %4462 = vst [vmem:[#allocation8_spill] sm:$0xff] %v3883_v1  ;;  %4463 = vst [vmem:[#allocation9_spill] sm:$0xff] %v3885_v3 }
 0x126   : > { %v924_v6 = vpop.f32.mrf.mxu0  ;;  %v1100_v7 = vpop.f32.mrf.mxu1 }
 0x127   : > { %v3962_v6 = vpop.permute.xlu0 %1586  ;;  %v3964_v7 = vpop.permute.xlu1 %1598 }
 0x128   : > { %v3891_v8 = vpop.f32.mrf.mxu0  ;;  %v3893_v9 = vpop.f32.mrf.mxu1 }
 0x129   : > { %4464 = vst [vmem:[#allocation10_spill] sm:$0xff] %v3891_v8  ;;  %4465 = vst [vmem:[#allocation11_spill] sm:$0xff] %v3893_v9 }
 0x12a   : > { %v929_v10 = vpop.f32.mrf.mxu0  ;;  %v1105_v11 = vpop.f32.mrf.mxu1 }
 0x12c   : > { %v3895_v12 = vpop.f32.mrf.mxu0  ;;  %v3897_v13 = vpop.f32.mrf.mxu1 }
 0x12d   : > { %4466 = vst [vmem:[#allocation12_spill] sm:$0xff] %v3895_v12  ;;  %4467 = vst [vmem:[#allocation13_spill] sm:$0xff] %v3897_v13 }
 0x12e   : > { %v932_v16 = vpop.f32.mrf.mxu0  ;;  %v1108_v17 = vpop.f32.mrf.mxu1 }
 0x130   : > { %v3903_v18 = vpop.f32.mrf.mxu0  ;;  %v3905_v19 = vpop.f32.mrf.mxu1 }
 0x131   : > { %4468 = vst [vmem:[#allocation14_spill] sm:$0xff] %v3903_v18  ;;  %4469 = vst [vmem:[#allocation15_spill] sm:$0xff] %v3905_v19 }
 0x132   : > { %v937_v20 = vpop.f32.mrf.mxu0  ;;  %v1113_v21 = vpop.f32.mrf.mxu1 }
 0x134   : > { %v3907_v22 = vpop.f32.mrf.mxu0  ;;  %v3909_v23 = vpop.f32.mrf.mxu1 }
 0x135   : > { %4470 = vst [vmem:[#allocation16_spill] sm:$0xff] %v3909_v23 }
 0x136   : > { %v940_v26 = vpop.f32.mrf.mxu0  ;;  %v1116_v27 = vpop.f32.mrf.mxu1 }
 0x137   : > { %v3974_v26 = vpop.permute.xlu1 %1406  ;;  %v3976_v27 = vpop.permute.xlu0 %1394 }
 0x138   : > { %v3915_v28 = vpop.f32.mrf.mxu0  ;;  %v3917_v29 = vpop.f32.mrf.mxu1 }
 0x139   : > { %4471 = vst [vmem:[#allocation17_spill] sm:$0xff] %v3917_v29 }
 0x13a   : > { %v945_v30 = vpop.f32.mrf.mxu0  ;;  %v1121_v31 = vpop.f32.mrf.mxu1 }
 0x13c   : > { %v3919_v32 = vpop.f32.mrf.mxu0  ;;  %v3921_v33 = vpop.f32.mrf.mxu1 }
 0x13d   : > { %4472 = vst [vmem:[#allocation18_spill] sm:$0xff] %v3921_v33 }
 0x13e   : > { %v948_v36 = vpop.f32.mrf.mxu0  ;;  %v1124_v37 = vpop.f32.mrf.mxu1 }
 0x140   : > { %v3927_v38 = vpop.f32.mrf.mxu0  ;;  %v3929_v39 = vpop.f32.mrf.mxu1 }
 0x141   : > { %4473 = vst [vmem:[#allocation19_spill] sm:$0xff] %v3929_v39 }
 0x142   : > { %v953_v41 = vpop.f32.mrf.mxu0  ;;  %v1129_v42 = vpop.f32.mrf.mxu1 }
 0x144   : > { %v3938_v45 = vpop.f32.mrf.mxu0  ;;  %v3940_v46 = vpop.f32.mrf.mxu1 }
 0x145   : > { %4474 = vst [vmem:[#allocation20_spill] sm:$0xff] %v3940_v46 }
 0x146   : > { %v956_v49 = vpop.f32.mrf.mxu0  ;;  %v1132_v50 = vpop.f32.mrf.mxu1 }
 0x147   : > { %v3986_v50 = vpop.permute.xlu1 %1574 }
 0x148   : > { %v3946_v51 = vpop.f32.mrf.mxu0  ;;  %v3948_v52 = vpop.f32.mrf.mxu1 }
 0x149   : > { %4475 = vst [vmem:[#allocation21_spill] sm:$0xff] %v3948_v52 }
 0x14a   : > { %v961_v55 = vpop.f32.mrf.mxu0  ;;  %v1137_v56 = vpop.f32.mrf.mxu1 }
 0x14b   : > { %v3988_v55 = vpop.permute.xlu0 %1562 }
 0x14c   : > { %v3954_v57 = vpop.f32.mrf.mxu0  ;;  %v3956_v58 = vpop.f32.mrf.mxu1 }
 0x14d   : > { %4476 = vst [vmem:[#allocation22_spill] sm:$0xff] %v3956_v58 }
 0x14e   : > { %v964_v63 = vpop.f32.mrf.mxu0  ;;  %v1140_v0 = vpop.f32.mrf.mxu1 }
 0x150   : > { %v3966_v10 = vpop.f32.mrf.mxu0  ;;  %v3968_v11 = vpop.f32.mrf.mxu1 }
 0x151   : > { %4477 = vst [vmem:[#allocation23_spill] sm:$0xff] %v3968_v11 }
 0x152   : > { %v969_v16 = vpop.f32.mrf.mxu0  ;;  %v1145_v17 = vpop.f32.mrf.mxu1 }
 0x154   : > { %v3970_v20 = vpop.f32.mrf.mxu0  ;;  %v3972_v21 = vpop.f32.mrf.mxu1 }
 0x155   : > { %4478 = vst [vmem:[#allocation24_spill] sm:$0xff] %v3972_v21  ;;  %v1256_v21 = vlaneseq }
 0x156   : > { %v972_v36 = vpop.f32.mrf.mxu0  ;;  %v1148_v37 = vpop.f32.mrf.mxu1 }
 0x157   : > { %v4056_v3 = vshrl.u32 %v1256_v21, 7 }
 0x158   : > { %v3982_v40 = vpop.f32.mrf.mxu0  ;;  %v3984_v41 = vpop.f32.mrf.mxu1 }
 0x159   : > { %4479 = vst [vmem:[#allocation25_spill] sm:$0xff] %v3984_v41  ;;  %4485 = vst [vmem:[#allocation31_spill] sm:$0xff] %v4056_v3 }
 0x15a   : > { %v977_v42 = vpop.f32.mrf.mxu0  ;;  %v1153_v49 = vpop.f32.mrf.mxu1 }
 0x15b   : > { %v4000_v42 = vpop.permute.xlu0 %1370  ;;  %v4002_v49 = vpop.permute.xlu1 %1382 }
 0x15c   : > { %v3990_v56 = vpop.f32.mrf.mxu0  ;;  %v3992_v63 = vpop.f32.mrf.mxu1 }
 0x15d   : > { %4480 = vst [vmem:[#allocation26_spill] sm:$0xff] %v3992_v63 }
 0x15e   : > { %v980_v17 = vpop.f32.mrf.mxu0  ;;  %v1156_v36 = vpop.f32.mrf.mxu1 }
 0x15f   : > { %v4008_v31 = vpop.permute.xlu0 %1538  ;;  %v4010_v5 = vpop.permute.xlu1 %1550 }
 0x160   : > { %v3998_v37 = vpop.f32.mrf.mxu0 }
 0x161   : > { %4481 = vst [vmem:[#allocation27_spill] sm:$0xff] %v3998_v37 }
 0x162   : > { %v985_v25 = vpop.f32.mrf.mxu0 }
 0x163   : > { %v4016_v15 = vpop.permute.xlu0 %1346  ;;  %v4020_v4 = vpop.permute.xlu1 %1358 }
 0x164   : > { %v4004_v35 = vpop.f32.mrf.mxu0 }
 0x165   : > { %4482 = vst [vmem:[#allocation28_spill] sm:$0xff] %v4004_v35 }
 0x166   : > { %v988_v60 = vpop.f32.mrf.mxu0 }
 0x167   : > { %v4024_v48 = vpop.permute.xlu0 %1514  ;;  %v4026_v34 = vpop.permute.xlu1 %1526 }
 0x168   : > { %v4012_v16 = vpop.f32.mrf.mxu0 }
 0x169   : > { %4483 = vst [vmem:[#allocation29_spill] sm:$0xff] %v4012_v16 }
 0x16a   : > { %v993_v17 = vpop.f32.mrf.mxu0 }
 0x16b   : > { %v4032_v30 = vpop.permute.xlu0 %1322  ;;  %v4034_v2 = vpop.permute.xlu1 %1334 }
 0x16c   : > { %v4014_v36 = vpop.f32.mrf.mxu0 }
 0x16d   : > { %4484 = vst [vmem:[#allocation30_spill] sm:$0xff] %v4014_v36 }
 0x16e   : > { %v996_v14 = vpop.f32.mrf.mxu0 }
 0x16f   : > { %v4038_v19 = vpop.permute.xlu0 %1490 }
 0x170   : > { %v4022_v24 = vpop.f32.mrf.mxu0 }
 0x172   : > { %v1001_v60 = vpop.f32.mrf.mxu0 }
 0x173   : > { %v4040_v60 = vpop.permute.xlu1 %1502 }
 0x174   : > { %v4028_v47 = vpop.f32.mrf.mxu0 }
 0x176   : > { %v1004_v17 = vpop.f32.mrf.mxu0 }
 0x177   : > { %v4046_v17 = vpop.permute.xlu0 %1298  ;;  %v4048_v39 = vpop.permute.xlu1 %1310 }
 0x178   : > { %v4030_v59 = vpop.f32.mrf.mxu0 }
 0x17a   : > { %v1009_v25 = vpop.f32.mrf.mxu0 }
 0x17b   : > { %v4052_v58 = vpop.permute.xlu0 %1466  ;;  %v4054_v41 = vpop.permute.xlu1 %1478 }
 0x17c   : > { %v4036_v0 = vpop.f32.mrf.mxu0 }
 0x17e   : > { %v1012_v14 = vpop.f32.mrf.mxu0 }
 0x17f   : > { %v3270_v14 = vmov 839922192   ;;  %v4058_v13 = vpop.permute.xlu0 %1274  ;;  %v4060_v61 = vpop.permute.xlu1 %1286 }
 0x180   : > { %v4042_v23 = vpop.f32.mrf.mxu0  ;;  %v1254_v11 = vunpack.c.l.s4 %v3270_v14 }
 0x182   : > { %v1017_v29 = vpop.f32.mrf.mxu0 }
 0x183   : > { %v1255_v29 = vunpack.c.0.s8 %v1254_v11  ;;  %v4069_v11 = vpop.permute.xlu0 %1442 }
 0x184   : > { %v4044_v33 = vpop.f32.mrf.mxu0 }
 0x186   : > { %v1020_v46 = vpop.f32.mrf.mxu0 }
 0x188   : > { %v4050_v52 = vpop.f32.mrf.mxu0 }
 0x18a   : > { %v1025_v25 = vpop.f32.mrf.mxu0 }
 0x18b   : > { %v4063_v25 = vsub.s32 %v1255_v29, %v4056_v3 }
 0x18c   : > { %v1026_v63 = vpop.f32.mrf.mxu0 }
 0x18d   : > { %v1427_v14 = vrot.slane %v3936_v44, %v4063_v25  ;;  %v1439_v37 = vrot.slane %v3952_v54, %v4063_v25  ;;  %v1619_v21 = vrot.slane %v3934_v43, %v4063_v25  ;;  %v1631_v35 = vrot.slane %v3950_v53, %v4063_v25 }
 0x18e   : > { %v1028_v62 = vpop.f32.mrf.mxu0  ;;  %v1595_v3 = vrot.slane %v3962_v6, %v4063_v25  ;;  %v1607_v44 = vrot.slane %v3964_v7, %v4063_v25  ;;  %v1415_v54 = vrot.slane %v3974_v26, %v4063_v25  ;;  %v1583_v53 = vrot.slane %v3986_v50, %v4063_v25 }
 0x18f   : > { %v2932_v8 = vcombine.low %v1427_v14, %v1439_v37  ;;  %v2940_v16 = vcombine.low %v1619_v21, %v1631_v35  ;;  %v1571_v36 = vrot.slane %v3988_v55, %v4063_v25  ;;  %v1391_v7 = vrot.slane %v4002_v49, %v4063_v25  ;;  %v4093_v37 = vpop.permute.xlu0 %1250 }
 0x190   : > { %v1031_v9 = vpop.f32.mrf.mxu0  ;;  %v2939_v18 = vcombine.low %v1595_v3, %v1607_v44  ;;  %v1379_v26 = vrot.slane %v4000_v42, %v4063_v25  ;;  %v4486_v35 = vpack.c.bf16 %v3990_v56, %v3982_v40  ;;  %v1547_v55 = vrot.slane %v4008_v31, %v4063_v25 }
 0x191   : > { %v1171_v49 = vpack.c.bf16 %v1026_v63, %v4050_v52  ;;  %v2938_v44 = vcombine.low %v1571_v36, %v1583_v53  ;;  %v1535_v31 = vrot.slane %v4026_v34, %v4063_v25  ;;  %v4488_v52 = vpack.c.bf16 %v3970_v20, %v3966_v10 }
 0x192   : > { %v1033_v46 = vpop.f32.mrf.mxu0  ;;  %v2155_v50 = vadd.bf16 %v2932_v8, %v4486_v35  ;;  %v4487_v8 = vmov 0   ;;  %v1170_v36 = vpack.c.bf16 %v4044_v33, %v4042_v23  ;;  %v1331_v10 = vrot.slane %v4032_v30, %v4063_v25 }
 0x193   : > { %v4075_v46 = vpop.permute.xlu1 %1454  ;;  %v4111_v40 = vpop.permute.xlu0 %1802  ;;  %v4489_v23 = vpack.c.bf16 %v3954_v57, %v3946_v51  ;;  %v1319_v57 = vrot.slane %v4048_v39, %v4063_v25  ;;  %v1168_v39 = vpack.c.bf16 %v4028_v47, %v4022_v24  ;;  %v4491_v24 = vpack.c.bf16 %v3919_v32, %v3915_v28 }
 0x194   : > { %v1034_v1 = vpop.f32.mrf.mxu0  ;;  %v1259_v32 = vrot.slane %v4093_v37, %v4063_v25 }
 0x195   : > { %v1172_v12 = vpack.c.bf16 %v1034_v1, %v1031_v9  ;;  %v1559_v1 = vrot.slane %v4010_v5, %v4063_v25  ;;  %v1367_v5 = vrot.slane %v4020_v4, %v4063_v25  ;;  %v2185_v4 = vmax.bf16 %v4487_v8, %v2155_v50 }
 0x196   : > { %v1036_v62 = vpop.f32.mrf.mxu0 }
 0x197   : > { %v1403_v62 = vrot.slane %v3976_v27, %v4063_v25  ;;  %v4097_v9 = vpop.permute.xlu1 %1262  ;;  %v2162_v42 = vadd.bf16 %v2939_v18, %v1172_v12  ;;  %v1523_v12 = vrot.slane %v4024_v48, %v4063_v25 }
 0x198   : > { %v1039_v29 = vpop.f32.mrf.mxu0  ;;  %v1271_v28 = vrot.slane %v4097_v9, %v4063_v25 }
 0x199   : > { %v2931_v14 = vcombine.low %v1403_v62, %v1415_v54  ;;  %v2930_v54 = vcombine.low %v1379_v26, %v1391_v7  ;;  %v1355_v62 = vrot.slane %v4016_v15, %v4063_v25  ;;  %v2937_v15 = vcombine.low %v1547_v55, %v1559_v1  ;;  %v4141_v1 = vpop.permute.xlu0 %1778 }
 0x19a   : > { %v1041_v43 = vpop.f32.mrf.mxu0  ;;  %v2192_v34 = vmax.bf16 %v4487_v8, %v2162_v42  ;;  %v2936_v20 = vcombine.low %v1523_v12, %v1535_v31  ;;  %v1511_v7 = vrot.slane %v4040_v60, %v4063_v25 }
 0x19b   : > { %v4118_v18 = vpop.permute.xlu1 %1814  ;;  %v2154_v63 = vadd.bf16 %v2931_v14, %v4488_v52  ;;  %v2161_v43 = vadd.bf16 %v2938_v44, %v1171_v49  ;;  %v2929_v48 = vcombine.low %v1355_v62, %v1367_v5  ;;  %v2153_v33 = vadd.bf16 %v2930_v54, %v4489_v23 }
 0x19c   : > { %v1042_v6 = vpop.f32.mrf.mxu0  ;;  %v1499_v14 = vrot.slane %v4038_v19, %v4063_v25  ;;  %v2160_v30 = vadd.bf16 %v2937_v15, %v1170_v36  ;;  %v1307_v19 = vrot.slane %v4046_v17, %v4063_v25  ;;  %v1823_v37 = vrot.slane %v4118_v18, %v4063_v25 }
 0x19d   : > { %v1173_v27 = vpack.c.bf16 %v1042_v6, %v1039_v29  ;;  %v1343_v6 = vrot.slane %v4034_v2, %v4063_v25  ;;  %v2184_v26 = vmax.bf16 %v4487_v8, %v2154_v63  ;;  %v1169_v2 = vpack.c.bf16 %v4036_v0, %v4030_v59 }
 0x19e   : > { %v1044_v3 = vpop.f32.mrf.mxu0  ;;  %v2191_v35 = vmax.bf16 %v4487_v8, %v2161_v43  ;;  %v1475_v59 = vrot.slane %v4052_v58, %v4063_v25  ;;  %v4490_v0 = vpack.c.bf16 %v3938_v45, %v3927_v38  ;;  %v2183_v49 = vmax.bf16 %v4487_v8, %v2153_v33  ;;  %v4171_v45 = vpop.permute.xlu0 %1754 }
 0x19f   : > { %v2163_v21 = vadd.bf16 %v2940_v16, %v1173_v27  ;;  %v4146_v50 = vpop.permute.xlu1 %1790  ;;  %v2928_v51 = vcombine.low %v1331_v10, %v1343_v6  ;;  %v1487_v3 = vrot.slane %v4054_v41, %v4063_v25  ;;  %v2159_v44 = vadd.bf16 %v2936_v20, %v1169_v2  ;;  %v4495_v6 = vld [vmem:[#allocation29_spill] sm:$0xff] }
 0x1a0   : > { %v4105_v29 = vpop.f32.mrf.mxu0  ;;  %v2152_v55 = vadd.bf16 %v2929_v48, %v4490_v0  ;;  %v2190_v17 = vmax.bf16 %v4487_v8, %v2160_v30  ;;  %v1295_v58 = vrot.slane %v4060_v61, %v4063_v25  ;;  %v1283_v38 = vrot.slane %v4058_v13, %v4063_v25  ;;  %v4494_v48 = vld [vmem:[#allocation30_spill] sm:$0xff] }
 0x1a1   : > { %v2193_v56 = vmax.bf16 %v4487_v8, %v2163_v21  ;;  %v2935_v21 = vcombine.low %v1499_v14, %v1511_v7  ;;  %v2927_v41 = vcombine.low %v1307_v19, %v1319_v57  ;;  %v2934_v5 = vcombine.low %v1475_v59, %v1487_v3  ;;  %v4501_v57 = vld [vmem:[#allocation27_spill] sm:$0xff] }
 0x1a2   : > { %v1049_v16 = vpop.f32.mrf.mxu0  ;;  %v2151_v47 = vadd.bf16 %v2928_v51, %v4491_v24  ;;  %v2182_v62 = vmax.bf16 %v4487_v8, %v2152_v55  ;;  %v1463_v61 = vrot.slane %v4075_v46, %v4063_v25  ;;  %v1451_v13 = vrot.slane %v4069_v11, %v4063_v25  ;;  %v4500_v51 = vld [vmem:[#allocation28_spill] sm:$0xff] }
 0x1a3   : > { %2983 = vmatprep.subr.bf16.mxu1 %v2193_v56  ;;  %v4177_v56 = vpop.permute.xlu1 %1766  ;;  %v2158_v12 = vadd.bf16 %v2935_v21, %v1168_v39  ;;  %v2189_v52 = vmax.bf16 %v4487_v8, %v2159_v44  ;;  %v4492_v16 = vld [vmem:[#allocation14_spill] sm:$0xff]  ;;  %v4496_v10 = vpack.c.bf16 %v4494_v48, %v4495_v6  ;;  %v2925_v33 = vcombine.low %v1259_v32, %v1271_v28  ;;  %v4503_v55 = vld [vmem:[#allocation8_spill] sm:$0xff]  ;;  %v4509_v32 = vld [vmem:[#allocation9_spill] sm:$0xff] }
 0x1a4   : > { %v4127_v53 = vpop.f32.mrf.mxu0  ;;  %2984 = vmatpush3.bf16.msra.mxu1 %v2185_v4  ;;  %v2926_v4 = vcombine.low %v1283_v38, %v1295_v58  ;;  %v4493_v46 = vpack.c.bf16 %v3907_v22, %v4492_v16  ;;  %v2181_v11 = vmax.bf16 %v4487_v8, %v2151_v47  ;;  %v2933_v43 = vcombine.low %v1451_v13, %v1463_v61  ;;  %v3194_v28 = vld [vmem:[%s4419_s3 + $0x24] ss:$16 sps:$4 sm:$0xff]   ;;  %v4510_v16 = vld [vmem:[#allocation7_spill] sm:$0xff] }
 0x1a5   : > { %2985 = vmatprep.subr.bf16.mxu1 %v2192_v34  ;;  %v4194_v34 = vpop.permute.xlu0 %1730  ;;  %v2157_v20 = vadd.bf16 %v2934_v5, %v4496_v10  ;;  %v2188_v7 = vmax.bf16 %v4487_v8, %v2158_v12  ;;  %v1811_v22 = vrot.slane %v4111_v40, %v4063_v25  ;;  %v4502_v19 = vpack.c.bf16 %v4500_v51, %v4501_v57 }
 0x1a6   : > { %v1052_v27 = vpop.f32.mrf.mxu0  ;;  %v2150_v15 = vadd.bf16 %v2927_v41, %v4493_v46  ;;  %v1787_v44 = vrot.slane %v4141_v1, %v4063_v25  ;;  %v3191_v1 = vld [vmem:[%s4419_s3] ss:$16 sps:$4 sm:$0xff]   ;;  %v4511_v46 = vpack.c.bf16 %v4509_v32, %v4510_v16 }
 0x1a7   : > { %v4200_v9 = vpop.permute.xlu1 %1742  ;;  %v4498_v27 = vld [vmem:[#allocation10_spill] sm:$0xff]  ;;  %v2156_v3 = vadd.bf16 %v2933_v43, %v4502_v19  ;;  %v2187_v59 = vmax.bf16 %v4487_v8, %v2157_v20  ;;  %v2948_v40 = vcombine.low %v1811_v22, %v1823_v37  ;;  %v3199_v37 = vld [vmem:[%s4419_s3 + $0xc] ss:$16 sps:$4 sm:$0xff]  }
 0x1a8   : > { %v4148_v60 = vpop.f32.mrf.mxu0  ;;  %2986 = vmatpush3.bf16.msra.mxu1 %v2184_v26  ;;  %v4497_v26 = vld [vmem:[#allocation12_spill] sm:$0xff]  ;;  %v2180_v30 = vmax.bf16 %v4487_v8, %v2150_v15 }
 0x1a9   : > { %2987 = vmatprep.subr.bf16.mxu1 %v2191_v35  ;;  %v4499_v14 = vpack.c.bf16 %v4497_v26, %v4498_v27  ;;  %v4218_v18 = vpop.permute.xlu0 %1706  ;;  %v2186_v41 = vmax.bf16 %v4487_v8, %v2156_v3  ;;  %v1775_v26 = vrot.slane %v4177_v56, %v4063_v25 }
 0x1aa   : > { %v1057_v42 = vpop.f32.mrf.mxu0 }
 0x1ab   : > { %v2149_v2 = vadd.bf16 %v2926_v4, %v4499_v14  ;;  %v1719_v58 = vpop.permute.xlu1 %1718  ;;  %v1739_v14 = vrot.slane %v4194_v34, %v4063_v25 }
 0x1ac   : > { %v4165_v54 = vpop.f32.mrf.mxu0  ;;  %2988 = vmatpush3.bf16.msra.mxu1 %v2183_v49  ;;  %v4504_v49 = vld [vmem:[#allocation6_spill] sm:$0xff] }
 0x1ad   : > { %2989 = vmatprep.subr.bf16.mxu1 %v2190_v17  ;;  %v4505_v42 = vpack.c.bf16 %v4503_v55, %v4504_v49  ;;  %v2179_v39 = vmax.bf16 %v4487_v8, %v2149_v2  ;;  %v1799_v17 = vrot.slane %v4146_v50, %v4063_v25  ;;  %v1751_v2 = vrot.slane %v4200_v9, %v4063_v25 }
 0x1ae   : > { %v1060_v31 = vpop.f32.mrf.mxu0 }
 0x1af   : > { %v2148_v21 = vadd.bf16 %v2925_v33, %v4505_v42  ;;  %v2947_v47 = vcombine.low %v1787_v44, %v1799_v17  ;;  %v4507_v31 = vld [vmem:[#allocation11_spill] sm:$0xff]  ;;  %v1695_v50 = vpop.permute.xlu1 %1694  ;;  %v1763_v33 = vrot.slane %v4171_v45, %v4063_v25  ;;  %v2945_v3 = vcombine.low %v1739_v14, %v1751_v2 }
 0x1b0   : > { %v4184_v63 = vpop.f32.mrf.mxu0  ;;  %2990 = vmatpush3.bf16.msra.mxu1 %v2182_v62  ;;  %v4506_v62 = vld [vmem:[#allocation13_spill] sm:$0xff]  ;;  %v1703_v17 = vrot.slane %v1695_v50, %v4063_v25  ;;  %v4516_v14 = vld [vmem:[#allocation23_spill] sm:$0xff] }
 0x1b1   : > { %2991 = vmatprep.subr.bf16.mxu1 %v2189_v52  ;;  %v2178_v24 = vmax.bf16 %v4487_v8, %v2148_v21  ;;  %v4508_v61 = vpack.c.bf16 %v4506_v62, %v4507_v31  ;;  %v1683_v52 = vpop.permute.xlu0 %1682  ;;  %v2170_v15 = vadd.bf16 %v2947_v47, %v4511_v46  ;;  %v2946_v45 = vcombine.low %v1763_v33, %v1775_v26 }
 0x1b2   : > { %v1065_v36 = vpop.f32.mrf.mxu0  ;;  %v1691_v44 = vrot.slane %v1683_v52, %v4063_v25  ;;  %v1175_v62 = vpack.c.bf16 %v4165_v54, %v4148_v60 }
 0x1b3   : > { %v2171_v13 = vadd.bf16 %v2948_v40, %v4508_v61  ;;  %v1671_v6 = vpop.permute.xlu1 %1670  ;;  %v2200_v10 = vmax.bf16 %v4487_v8, %v2170_v15  ;;  %v1727_v40 = vrot.slane %v1719_v58, %v4063_v25 }
 0x1b4   : > { %v4202_v23 = vpop.f32.mrf.mxu0  ;;  %2992 = vmatpush3.bf16.msra.mxu1 %v2181_v11 }
 0x1b5   : > { %2993 = vmatprep.subr.bf16.mxu1 %v2188_v7  ;;  %v2201_v11 = vmax.bf16 %v4487_v8, %v2171_v13  ;;  %v1659_v48 = vpop.permute.xlu0 %1658  ;;  %v3196_v7 = vld [vmem:[%s4419_s3 + $0x20] ss:$16 sps:$4 sm:$0xff]  }
 0x1b6   : > { %v1068_v35 = vpop.f32.mrf.mxu0 }
 0x1b7   : > { %v1647_v35 = vpop.permute.xlu1 %1646 }
 0x1b8   : > { %v4216_v0 = vpop.f32.mrf.mxu0  ;;  %2994 = vmatpush3.bf16.msra.mxu1 %v2180_v30  ;;  %v1655_v13 = vrot.slane %v1647_v35, %v4063_v25 }
 0x1b9   : > { %2995 = vmatprep.subr.bf16.mxu1 %v2187_v59  ;;  %v1635_v30 = vpop.permute.xlu0 %1634  ;;  %v1715_v59 = vrot.slane %v4218_v18, %v4063_v25  ;;  %v1176_v18 = vpack.c.bf16 %v4202_v23, %v4184_v63 }
 0x1ba   : > { %v1073_v38 = vpop.f32.mrf.mxu0  ;;  %v1643_v23 = vrot.slane %v1635_v30, %v4063_v25 }
 0x1bb   : > { %v1959_v21 = vpop.permute.xlu1 %1958 }
 0x1bc   : > { %v1074_v5 = vpop.f32.mrf.mxu0  ;;  %2996 = vmatpush3.bf16.msra.mxu1 %v2179_v39  ;;  %v2944_v39 = vcombine.low %v1715_v59, %v1727_v40  ;;  %v1967_v52 = vrot.slane %v1959_v21, %v4063_v25  ;;  %v4519_v59 = vld [vmem:[#allocation21_spill] sm:$0xff] }
 0x1bd   : > { %2997 = vmatprep.subr.bf16.mxu1 %v2186_v41  ;;  %v1177_v55 = vpack.c.bf16 %v1074_v5, %v4216_v0  ;;  %v1947_v42 = vpop.permute.xlu0 %1946  ;;  %v2943_v0 = vcombine.low %v1691_v44, %v1703_v17  ;;  %v1667_v41 = vrot.slane %v1659_v48, %v4063_v25  ;;  %v1679_v5 = vrot.slane %v1671_v6, %v4063_v25  ;;  %v4512_v6 = vld [vmem:[#allocation26_spill] sm:$0xff]  ;;  %v4521_v44 = vld [vmem:[#allocation20_spill] sm:$0xff]  ;;  %v4522_v17 = vld [vmem:[#allocation19_spill] sm:$0xff] }
 0x1be   : > { %v1076_v12 = vpop.f32.mrf.mxu0 }
 0x1bf   : > { %v2167_v58 = vadd.bf16 %v2944_v39, %v1177_v55  ;;  %v1935_v47 = vpop.permute.xlu1 %1934  ;;  %v2166_v31 = vadd.bf16 %v2943_v0, %v1176_v18  ;;  %v2942_v63 = vcombine.low %v1667_v41, %v1679_v5  ;;  %v1955_v12 = vrot.slane %v1947_v42, %v4063_v25  ;;  %v4524_v41 = vld [vmem:[#allocation18_spill] sm:$0xff]  ;;  %v4525_v5 = vld [vmem:[#allocation17_spill] sm:$0xff] }
 0x1c0   : > { %v1079_v4 = vpop.f32.mrf.mxu0  ;;  %2998 = vmatpush3.bf16.msra.mxu1 %v2178_v24  ;;  %v1943_v46 = vrot.slane %v1935_v47, %v4063_v25  ;;  %v4523_v18 = vpack.c.bf16 %v4521_v44, %v4522_v17 }
 0x1c1   : > { %2310 = vmatprep.subr.bf16.mxu1 %v4487_v8  ;;  %v1923_v24 = vpop.permute.xlu0 %1922  ;;  %v2197_v61 = vmax.bf16 %v4487_v8, %v2167_v58  ;;  %v2165_v50 = vadd.bf16 %v2942_v63, %v1175_v62  ;;  %v2196_v60 = vmax.bf16 %v4487_v8, %v2166_v31  ;;  %v2954_v32 = vcombine.low %v1955_v12, %v1967_v52  ;;  %v4527_v31 = vld [vmem:[#allocation16_spill] sm:$0xff] }
 0x1c2   : > { %v1081_v36 = vpop.f32.mrf.mxu0  ;;  %v1931_v16 = vrot.slane %v1923_v24, %v4063_v25  ;;  %v4526_v24 = vpack.c.bf16 %v4524_v41, %v4525_v5  ;;  %v3197_v52 = vld [vmem:[%s4419_s3 + $0x8] ss:$16 sps:$4 sm:$0xff]  }
 0x1c3   : > { %2294 = vmatmul.mubr.bf16.vlgmr.msra.gmra.mxu1 %v3191_v1  ;;  %v1174_v1 = vpack.c.bf16 %v4127_v53, %v4105_v29 }
 0x1c4   : > { %v1082_v43 = vpop.f32.mrf.mxu0  ;;  %2311 = vmatpush1.bf16.msra.mxu1 %v2201_v11  ;;  %2301 = vmatprep.mubr.bf16.mxu1 %v3194_v28  ;;  %v2941_v28 = vcombine.low %v1643_v23, %v1655_v13  ;;  %v2195_v11 = vmax.bf16 %v4487_v8, %v2165_v50  ;;  %v2953_v48 = vcombine.low %v1931_v16, %v1943_v46  ;;  %v3202_v50 = vld [vmem:[%s4419_s3 + $0x28] ss:$16 sps:$4 sm:$0xff]  }
 0x1c5   : > { %2312 = vmatprep.subr.bf16.mxu1 %v4487_v8  ;;  %v1178_v57 = vpack.c.bf16 %v1082_v43, %v1079_v4  ;;  %v1899_v54 = vpop.permute.xlu0 %1898  ;;  %v1911_v4 = vpop.permute.xlu1 %1910 }
 0x1c6   : > { %v1084_v20 = vpop.f32.mrf.mxu0  ;;  %v2164_v15 = vadd.bf16 %v2941_v28, %v1174_v1  ;;  %v1907_v29 = vrot.slane %v1899_v54, %v4063_v25  ;;  %v1919_v53 = vrot.slane %v1911_v4, %v4063_v25  ;;  %v3200_v1 = vld [vmem:[%s4419_s3 + $0x2c] ss:$16 sps:$4 sm:$0xff]  }
 0x1c7   : > { %v2168_v9 = vadd.bf16 %v2945_v3, %v1178_v57  ;;  %v4518_v3 = vld [vmem:[#allocation22_spill] sm:$0xff] }
 0x1c8   : > { %v1087_v22 = vpop.f32.mrf.mxu0  ;;  %2313 = vmatpush1.bf16.msra.mxu1 %v2200_v10  ;;  %v4513_v10 = vld [vmem:[#allocation25_spill] sm:$0xff]  ;;  %v4520_v40 = vpack.c.bf16 %v4518_v3, %v4519_v59 }
 0x1c9   : > { %2314 = vmatprep.subr.bf16.mxu1 %v4487_v8  ;;  %v2198_v38 = vmax.bf16 %v4487_v8, %v2168_v9  ;;  %v1875_v36 = vpop.permute.xlu0 %1874  ;;  %v1887_v43 = vpop.permute.xlu1 %1886  ;;  %v4514_v20 = vpack.c.bf16 %v4512_v6, %v4513_v10 }
 0x1ca   : > { %v1089_v27 = vpop.f32.mrf.mxu0  ;;  %v1883_v33 = vrot.slane %v1875_v36, %v4063_v25  ;;  %v1895_v26 = vrot.slane %v1887_v43, %v4063_v25 }
 0x1cb   : > { %2302 = vmatmul.mubr.bf16.gmra.mxu1 %v3196_v7  ;;  %v2177_v7 = vadd.bf16 %v2954_v32, %v4514_v20  ;;  %v4515_v27 = vld [vmem:[#allocation24_spill] sm:$0xff] }
 0x1cc   : > { %v1090_v51 = vpop.f32.mrf.mxu0  ;;  %2963 = vmatprep.mubr.msk.bf16.mxu1 %vm2254_vm1, %v3199_v37  ;;  %v2952_v37 = vcombine.low %v1907_v29, %v1919_v53  ;;  %v4517_v2 = vpack.c.bf16 %v4515_v27, %v4516_v14 }
 0x1cd   : > { %v1179_v19 = vpack.c.bf16 %v1090_v51, %v1087_v22  ;;  %v2194_v22 = vmax.bf16 %v4487_v8, %v2164_v15  ;;  %v2207_v35 = vmax.bf16 %v4487_v8, %v2177_v7  ;;  %v1851_v51 = vpop.permute.xlu0 %1850 }
 0x1ce   : > { %v1092_v56 = vpop.f32.mrf.mxu0  ;;  %v2176_v30 = vadd.bf16 %v2953_v48, %v4517_v2  ;;  %v1859_v57 = vrot.slane %v1851_v51, %v4063_v25 }
 0x1cf   : > { %v2169_v34 = vadd.bf16 %v2946_v45, %v1179_v19  ;;  %v1863_v45 = vpop.permute.xlu1 %1862  ;;  %v2951_v56 = vcombine.low %v1883_v33, %v1895_v26 }
 0x1d0   : > { %v1871_v19 = vrot.slane %v1863_v45, %v4063_v25  ;;  %v2206_v55 = vmax.bf16 %v4487_v8, %v2176_v30 }
 0x1d1   : > { %v2199_v49 = vmax.bf16 %v4487_v8, %v2169_v34  ;;  %v2175_v34 = vadd.bf16 %v2952_v37, %v4520_v40  ;;  %v2174_v58 = vadd.bf16 %v2951_v56, %v4523_v18 }
 0x1d2   : > { %v2950_v9 = vcombine.low %v1859_v57, %v1871_v19 }
 0x1d3   : > { %2315 = vmatpush1.bf16.msra.mxu1 %v2199_v49  ;;  %v1827_v49 = vpop.permute.xlu0 %1826  ;;  %v1839_v42 = vpop.permute.xlu1 %1838  ;;  %v2204_v62 = vmax.bf16 %v4487_v8, %v2174_v58 }
 0x1d4   : > { %2316 = vmatprep.subr.bf16.mxu1 %v4487_v8  ;;  %v1835_v21 = vrot.slane %v1827_v49, %v4063_v25  ;;  %v1847_v39 = vrot.slane %v1839_v42, %v4063_v25  ;;  %v2173_v47 = vadd.bf16 %v2950_v9, %v4526_v24 }
 0x1d6   : > { %v2949_v0 = vcombine.low %v1835_v21, %v1847_v39  ;;  %v2203_v13 = vmax.bf16 %v4487_v8, %v2173_v47  ;;  %v3203_v39 = vld [vmem:[%s4421_s5] sm:$0xff]  }
 0x1d7   : > { %2317 = vmatpush1.bf16.msra.mxu1 %v2198_v38  ;;  %v2205_v38 = vmax.bf16 %v4487_v8, %v2175_v34  ;;  %v2392_v43 = vpop.permute.xlu0 %2391  ;;  %v2404_v48 = vpop.permute.xlu1 %2403 }
 0x1d8   : > { %2318 = vmatprep.subr.bf16.mxu1 %v4487_v8  ;;  %v2400_v7 = vrot.slane %v2392_v43, %v4063_v25 }
 0x1db   : > { %2319 = vmatpush1.bf16.msra.mxu1 %v2197_v61  ;;  %v4528_v61 = vld [vmem:[#allocation15_spill] sm:$0xff]  ;;  %v2368_v33 = vpop.permute.xlu0 %2367 }
 0x1dc   : > { %2320 = vmatprep.subr.bf16.mxu1 %v4487_v8  ;;  %v4529_v63 = vpack.c.bf16 %v4527_v31, %v4528_v61  ;;  %v2376_v30 = vrot.slane %v2368_v33, %v4063_v25  ;;  %v3204_v61 = vld [vmem:[%s4423_s7] sm:$0xff]  }
 0x1de   : > { %v2172_v23 = vadd.bf16 %v2949_v0, %v4529_v63  ;;  %v3205_v63 = vld [vmem:[%s4423_s7 + $0x8] sm:$0xff]  }
 0x1df   : > { %2321 = vmatpush1.bf16.msra.mxu1 %v2196_v60  ;;  %v3271_v60 = vmov 0.0   ;;  %v2487_v44 = vpop.permute.xlu0 %2486 }
 0x1e0   : > { %2322 = vmatprep.subr.bf16.mxu1 %v4487_v8  ;;  %v2202_v12 = vmax.bf16 %v4487_v8, %v2172_v23  ;;  %v2495_v58 = vrot.slane %v2487_v44, %v4063_v25  ;;  %v3206_v23 = vld [vmem:[%s4423_s7 + $0x10] ss:$0 sps:$4 sm:$0xff]  }
 0x1e3   : > { %2323 = vmatpush1.bf16.msra.mxu1 %v2195_v11 }
 0x1e4   : > { %2324 = vmatprep.subr.bf16.mxu1 %v4487_v8 }
 0x1e7   : > { %2325 = vmatpush1.bf16.msra.mxu1 %v2194_v22  ;;  %v2412_v22 = vrot.slane %v2404_v48, %v4063_v25 }
 0x1e8   : > { %2330 = vmatprep.subr.bf16.mxu1 %v4487_v8 }
 0x1e9   : > { %v2966_v59 = vcombine.low %v2400_v7, %v2412_v22 }
 0x1eb   : > { %2331 = vmatpush2.bf16.msra.mxu1 %v2207_v35  ;;  %v2380_v35 = vpop.permute.xlu1 %2379 }
 0x1ec   : > { %2332 = vmatprep.subr.bf16.mxu1 %v4487_v8  ;;  %v2388_v45 = vrot.slane %v2380_v35, %v4063_v25 }
 0x1ef   : > { %2333 = vmatpush2.bf16.msra.mxu1 %v2206_v55  ;;  %v2965_v55 = vcombine.low %v2376_v30, %v2388_v45  ;;  %v2499_v17 = vpop.permute.xlu1 %2498 }
 0x1f0   : > { %2334 = vmatprep.subr.bf16.mxu1 %v4487_v8 }
 0x1f3   : > { %2335 = vmatpush2.bf16.msra.mxu1 %v2205_v38  ;;  %v2507_v38 = vrot.slane %v2499_v17, %v4063_v25 }
 0x1f4   : > { %2336 = vmatprep.subr.bf16.mxu1 %v4487_v8 }
 0x1f5   : > { %v2969_v5 = vcombine.low %v2495_v58, %v2507_v38 }
 0x1f7   : > { %2337 = vmatpush2.bf16.msra.mxu1 %v2204_v62 }
 0x1f8   : > { %2338 = vmatprep.subr.bf16.mxu1 %v4487_v8 }
 0x1fb   : > { %2339 = vmatpush2.bf16.msra.mxu1 %v2203_v13  ;;  %v2611_v13 = vpop.permute.xlu0 %2610 }
 0x1fc   : > { %2340 = vmatprep.subr.bf16.mxu1 %v4487_v8 }
 0x1ff   : > { %2341 = vmatpush2.bf16.msra.mxu1 %v2202_v12  ;;  %v2623_v12 = vpop.permute.xlu1 %2622 }
 0x200   : > { %3018 = vmatprep.subr.bf16.mxu1 %v3271_v60 }
 0x202   : > { %2343 = vmatmul.mubr.bf16.vlgmr.msra.gmra.mxu1 %v3197_v52 }
 0x203   : > { %2964 = vmatprep.mubr.msk.bf16.mxu1 %vm2254_vm1, %v3200_v1  ;;  %v2619_v1 = vrot.slane %v2611_v13, %v4063_v25 }
 0x20a   : > { %2351 = vmatmul.mubr.bf16.gmra.mxu1 %v3202_v50  ;;  %v2631_v50 = vrot.slane %v2623_v12, %v4063_v25 }
 0x20b   : > { %3022 = vmatprep.mubr.msk.bf16.mxu1 %vm3272_vm2, %v3271_v60 }
 0x283   : > { %v2999_v54 = vpop.f32.mrf.mxu1 }
 0x285   : > { %v3000_v4 = vpop.f32.mrf.mxu1 }
 0x286   : > { %v3001_v26 = vadd.f32 %v3000_v4, %v2999_v54  ;;  %v2635_v4 = vpop.permute.xlu0 %2634 }
 0x287   : > { %v3002_v28 = vpop.f32.mrf.mxu1 }
 0x289   : > { %v3003_v32 = vpop.f32.mrf.mxu1 }
 0x28a   : > { %v3004_v20 = vadd.f32 %v3003_v32, %v3002_v28  ;;  %v2976_v32 = vcombine.low %v2619_v1, %v2631_v50  ;;  %v2659_v43 = vpop.permute.xlu0 %2658 }
 0x28b   : > { %v3005_v16 = vpop.f32.mrf.mxu1 }
 0x28d   : > { %v3006_v46 = vpop.f32.mrf.mxu1 }
 0x28e   : > { %v3007_v27 = vadd.f32 %v3006_v46, %v3005_v16  ;;  %v2647_v46 = vpop.permute.xlu1 %2646 }
 0x28f   : > { %v3008_v15 = vpop.f32.mrf.mxu1 }
 0x291   : > { %v3009_v11 = vpop.f32.mrf.mxu1 }
 0x292   : > { %v3010_v14 = vadd.f32 %v3009_v11, %v3008_v15 }
 0x2c2   : > { %v2344_v29 = vpop.f32.mrf.mxu1 }
 0x2c3   : > { %v2345_v57 = vadd.f32 %v3001_v26, %v2344_v29  ;;  %v2643_v29 = vrot.slane %v2635_v4, %v4063_v25 }
 0x2c4   : > { %v2346_v53 = vpop.f32.mrf.mxu1 }
 0x2c5   : > { %v2655_v53 = vrot.slane %v2647_v46, %v4063_v25 }
 0x2c6   : > { %v2347_v36 = vpop.f32.mrf.mxu1 }
 0x2c7   : > { %v2348_v2 = vadd.f32 %v3004_v20, %v2347_v36  ;;  %v2977_v7 = vcombine.low %v2643_v29, %v2655_v53 }
 0x2c8   : > { %v2349_v6 = vpop.f32.mrf.mxu1 }
 0x2c9   : > { %v2359_v40 = vpack.c.bf16 %v2348_v2, %v2345_v57  ;;  %v2667_v6 = vrot.slane %v2659_v43, %v4063_v25  ;;  %v2708_v2 = vpop.permute.xlu0 %2707 }
 0x2ca   : > { %v2352_v10 = vpop.f32.mrf.mxu1 }
 0x2cb   : > { %v2353_v19 = vadd.f32 %v3007_v27, %v2352_v10  ;;  %v2425_v49 = vadd.bf16 %v2965_v55, %v2359_v40  ;;  %v2703_v10 = vpop.permute.xlu1 %2702 }
 0x2cc   : > { %v2354_v37 = vpop.f32.mrf.mxu1 }
 0x2cd   : > { %v2427_v21 = vmax.bf16 %v4487_v8, %v2425_v49  ;;  %v2718_v49 = vpop.permute.xlu0 %2717 }
 0x2ce   : > { %v2355_v51 = vpop.f32.mrf.mxu1 }
 0x2cf   : > { %v2356_v56 = vadd.f32 %v3010_v14, %v2355_v51  ;;  %v2978_v14 = vcombine.low %v2667_v6, %v2667_v6 }
 0x2d0   : > { %v2357_v3 = vpop.f32.mrf.mxu1 }
 0x2d1   : > { %v2360_v34 = vpack.c.bf16 %v2356_v56, %v2353_v19  ;;  %v2713_v19 = vpop.permute.xlu1 %2712 }
 0x2d3   : > { %v2426_v9 = vadd.bf16 %v2966_v59, %v2360_v34 }
 0x2d5   : > { %v2428_v42 = vmax.bf16 %v4487_v8, %v2426_v9  ;;  %v2723_v17 = vpop.permute.xlu1 %2722 }
 0x2d7   : > { %3019 = vmatpush3.bf16.msra.mxu1 %v2428_v42 }
 0x2d8   : > { %3020 = vmatprep.subr.bf16.mxu1 %v3271_v60 }
 0x2db   : > { %3021 = vmatpush3.bf16.msra.mxu1 %v2427_v21 }
 0x2dc   : > { %3026 = vmatprep.subr.bf16.mxu1 %v3271_v60 }
 0x2de   : > { %3023 = vmatmul.mubr.msk.bf16.vlgmr.msra.gmra.mxu1 %vm2436_vm3, %v3203_v39 }
 0x2df   : > { %3028 = vmatprep.mubr.msk.bf16.mxu1 %vm3272_vm2, %v3271_v60 }
 0x39e   : > { %v2474_v18 = vpop.f32.mrf.mxu1 }
 0x3a0   : > { %v3024_v0 = vpop.f32.mrf.mxu1 }
 0x3a2   : > { %v2477_v41 = vpop.f32.mrf.mxu1 }
 0x3a3   : > { %v2481_v24 = vpack.c.bf16 %v2477_v41, %v2474_v18 }
 0x3a4   : > { %v3025_v47 = vpop.f32.mrf.mxu1 }
 0x3a5   : > { %v2514_v62 = vadd.bf16 %v2969_v5, %v2481_v24  ;;  %v4530_v24 = vld [vmem:[#allocation31_spill] sm:$0xff] }
 0x3a6   : > { %v2748_v47 = vsub.s32 0, %v4530_v24 }
 0x3a7   : > { %v2515_v31 = vmax.bf16 %v4487_v8, %v2514_v62 }
 0x3a9   : > { %3027 = vmatpush3.bf16.msra.mxu1 %v2515_v31  ;;  %v2744_v31 = vpop.permute.xlu0 %2743 }
 0x3ac   : > { %3029 = vmatmul.mubr.msk.bf16.vlgmr.msra.gmra.mxu1 %vm2534_vm4, %v3204_v61  ;;  %v2749_v61 = vrot.slane %v2744_v31, %v2748_v47 }
 0x3ad   : > { %3032 = vmatprep.mubr.msk.bf16.mxu1 %vm3272_vm2, %v3271_v60 }
 0x3b4   : > { %3033 = vmatmul.mubr.msk.bf16.gmra.mxu1 %vm2534_vm4, %v3205_v63 }
 0x3b5   : > { %3036 = vmatprep.mubr.msk.bf16.mxu1 %vm3272_vm2, %v3271_v60 }
 0x3bc   : > { %3037 = vmatmul.mubr.msk.bf16.gmra.mxu1 %vm2534_vm4, %v3206_v23 }
 0x46c   : > { %v2578_v52 = vpop.f32.mrf.mxu1 }
 0x46e   : > { %v3030_v54 = vpop.f32.mrf.mxu1 }
 0x470   : > { %v2581_v28 = vpop.f32.mrf.mxu1 }
 0x471   : > { %v2600_v16 = vpack.c.bf16 %v2581_v28, %v2578_v52 }
 0x472   : > { %v3031_v15 = vpop.f32.mrf.mxu1 }
 0x473   : > { %v2684_v60 = vadd.bf16 %v2976_v32, %v2600_v16 }
 0x474   : > { %v2586_v11 = vpop.f32.mrf.mxu1 }
 0x475   : > { %v2687_v36 = vmax.bf16 %v4487_v8, %v2684_v60 }
 0x476   : > { %v3034_v48 = vpop.f32.mrf.mxu1 }
 0x477   : > { %v2690_v22 = vunpack.c.l.bf16 %v2687_v36  ;;  %v2691_v37 = vunpack.c.h.bf16 %v2687_v36 }
 0x478   : > { %v2589_v20 = vpop.f32.mrf.mxu1 }
 0x479   : > { %v2601_v33 = vpack.c.bf16 %v2589_v20, %v2586_v11  ;;  %v2725_v35 = vmul.f32 %v2703_v10, %v2690_v22  ;;  %v2726_v51 = vmul.f32 %v2708_v2, %v2691_v37 }
 0x47a   : > { %v3035_v26 = vpop.f32.mrf.mxu1 }
 0x47b   : > { %v2685_v27 = vadd.bf16 %v2977_v7, %v2601_v33  ;;  %v2730_v34 = vadd.f32 %v2726_v51, %v2725_v35 }
 0x47c   : > { %v2594_v30 = vpop.f32.mrf.mxu1 }
 0x47d   : > { %v2688_v45 = vmax.bf16 %v4487_v8, %v2685_v27  ;;  %v2602_v57 = vpack.c.bf16 %v2594_v30, %v2594_v30 }
 0x47e   : > { %v3038_v56 = vpop.f32.mrf.mxu1 }
 0x47f   : > { %v2692_v3 = vunpack.c.l.bf16 %v2688_v45  ;;  %v2693_v25 = vunpack.c.h.bf16 %v2688_v45  ;;  %v2686_v59 = vadd.bf16 %v2978_v14, %v2602_v57 }
 0x480   : > { %v2597_v40 = vpop.f32.mrf.mxu1 }
 0x481   : > { %v2727_v55 = vmul.f32 %v2713_v19, %v2692_v3  ;;  %v2689_v9 = vmax.bf16 %v4487_v8, %v2686_v59  ;;  %v2728_v21 = vmul.f32 %v2718_v49, %v2693_v25 }
 0x482   : > { %v3039_v42 = vpop.f32.mrf.mxu1 }
 0x483   : > { %v2731_v39 = vadd.f32 %v2730_v34, %v2727_v55  ;;  %v2694_v44 = vunpack.c.l.bf16 %v2689_v9 }
 0x485   : > { %v2732_v18 = vadd.f32 %v2731_v39, %v2728_v21  ;;  %v2729_v58 = vmul.f32 %v2723_v17, %v2694_v44 }
 0x487   : > { %v2733_v38 = vadd.f32 %v2732_v18, %v2729_v58 }
 0x489   : > { %v2734_v0 = vrot.slane %v2733_v38, 4 }
 0x48b   : > { %v2735_v41 = vadd.f32 %v2734_v0, %v2733_v38 }
 0x48d   : > { %v2736_v5 = vrot.slane %v2735_v41, 2 }
 0x48f   : > { %v2737_v62 = vadd.f32 %v2736_v5, %v2735_v41 }
 0x491   : > { %v2738_v8 = vrot.slane %v2737_v62, 1 }
 0x493   : > { %v2739_v63 = vadd.f32 %v2738_v8, %v2737_v62 }
 0x495   : > { %v2750_v23 = vadd.f32 %v2749_v61, %v2739_v63 }
 0x497   : > { %2751 = vst [vmem:[%s383_s26] sm:$0x1] %v2750_v23 }
 0x498   : > { %3220 = shalt.err (!%p3217_p3)
}
 0x499   : > { %s3221_s0 = scalar_lea.hbm %s2763_s15, 16  ;;  %s3225_s26 = scalar_lea.hbm %s4427_s11, 32 }
 0x49a   : > { %p3222_p4 = scmp.ne.s32.totalorder %s2763_s15, %s3221_s0  ;;  %p3226_p9 = scmp.lt.s32.totalorder %s2763_s15, %s4427_s11 }
 0x49b   : > { %p3227_p10 = scmp.lt.s32.totalorder %s3225_s26, %s3221_s0 }
 0x49c   : > { %p3223_p7 = pnand %p3222_p4, %p3372_p5 }
 0x49d   : > { %p3228_p11 = por %p3227_p10, %p3226_p9 }
 0x49e   : > { %p3224_p8 = pneg %p3223_p7 }
 0x4a0   : > { %p3229_p12 = pnand %p3228_p11, %p3224_p8 }
 0x4a2   : > { %3232 = shalt.err (!%p3229_p12)
}
 0x4a3   : > { %3056 = dma.vmem_to_hbm [thread:$0]  (%p3372_p5), %s2766_s12, 16, %s2763_s15, %s2753_s16  }
 0x4a4 PF: > { %p3062_p13 = scmp.ge.s32.totalorder %s3267_s22, 2  ;;  %s2777_s17 = sand.u32 1, %s3255_s19  }
 0x4a5   : > { %s2778_s18 = scalar_lea.sflag [#allocation4], %s2777_s17 }
 0x4a6   : > { %p3059_p0 = pnand %p3062_p13, %p3376_p6 }
 0x4a8   : > { %p3060_p1 = pneg %p3059_p0 }
 0x4aa   : > { %3250 = dma.done.wait (%p3060_p1), %s2778_s18, 16  }
 0x4ab   : > { %3252 = vsyncadd (%p3060_p1), %s2778_s18, 4294967280  ;;  %p23_p2 = scmp.ge.s32.totalorder %s3360_s24, 4   ;;  %s4531_s19 = smov %s3259_s20 }
 0x4ac   : > { %s4532_s20 = smov %s3263_s21  ;;  %s4533_s21 = smov %s3370_s27 }
 0x4ad   : > { %s4534_s22 = smov %s3360_s24  ;;  %25 = sbr.rel (!%p23_p2) target bundleno = 6 (0x6), region = 99 }
 0x4b2   :  { %2782 = vsyncpa [#allocation4], 1 }
 0x4b3   :  { %2784 = vsyncpa [#allocation4 + $0x1], 1 }

</bundles_post_ra>
